<compile_context>
chip_gen: v5e
topology: v5e:2x2
jax: 0.10.0
libtpu: 0.0.40
codegen_flags: <defaults>
</compile_context>

<pallas_src>
import functools
import itertools
import math

import jax
import jax.numpy as jnp
from jax.experimental import pallas as pl
from jax.experimental.pallas import tpu as pltpu
from jax.scipy.special import logsumexp

NEG = -1e30  # finite "minus infinity" (avoids inf-inf NaNs inside the kernel)


def _logaddexp(a, b):
    m = jnp.maximum(a, b)
    d = jnp.abs(a - b)
    return m + jnp.log1p(jnp.exp(-d))


def _smooth_topk_svm_kernel(x_ref, y_ref, out_ref, *, k, tau, alpha, thresh):
    x = x_ref[...].astype(jnp.float32)          # (C, N): classes on sublanes
    y = y_ref[...]                              # (1, N) int32 labels
    c, n = x.shape
    sub = jax.lax.broadcasted_iota(jnp.int32, (c, n), 0)   # class idx per sublane

    onehot = sub == y                                                   # (C, N)
    x_gt = jnp.sum(jnp.where(onehot, x, 0.0), axis=0, keepdims=True)    # (1, N)
    x_ng = jnp.where(onehot, NEG, x)                                    # GT removed

    # ---- single merged top-(k+1) sweep over the non-GT scores ---------------
    def pop_max(xx):
        m = jnp.max(xx, axis=0, keepdims=True)                          # (1, N)
        is_m = xx == m
        first = jnp.min(jnp.where(is_m, sub, c), axis=0, keepdims=True)
        return m, jnp.where(sub == first, NEG, xx)

    xx = x_ng
    t = []                                        # t[0] >= t[1] >= ... >= t[k]
    top_sum = jnp.zeros((1, n), jnp.float32)      # sum of top-k of x_ng
    top_km1_sum = jnp.zeros((1, n), jnp.float32)  # sum of top-(k-1) of x_ng
    for i in range(k + 1):
        m, xx = pop_max(xx)
        t.append(m)
        if i < k:
            top_sum = top_sum + m
        if i == k - 2:
            top_km1_sum = top_sum

    # ---- detect_large: top_{k-1}/top_k of the FULL scores -------------------
    # merge x_gt into the already-sorted t[] by counting how many tops beat it
    cnt = jnp.zeros((1, n), jnp.int32)
    for i in range(k + 1):
        cnt = cnt + (t[i] > x_gt).astype(jnp.int32)

    def merged_at(j):                             # j-th largest of x_ng ∪ {x_gt}
        below = t[j - 1] if j >= 1 else t[0]      # only selected when cnt < j
        return jnp.where(cnt > j, t[j], jnp.where(cnt == j, x_gt, below))

    hard = (merged_at(k - 1) - merged_at(k)) >= (k * tau * math.log(thresh))

    # ---- hard top-k SVM loss -------------------------------------------------
    max_1 = top_sum / k + alpha
    max_2 = (top_km1_sum + x_gt) / k
    loss_hard = jnp.maximum(max_1 - max_2, 0.0)

    # ---- smooth top-k SVM loss ----------------------------------------------
    # log elementary symmetric polynomials sigma_0..sigma_k of exp(x/(k*tau))
    # over non-GT classes.  Orders 0..k live on the sublane axis of one (R, N)
    # state; each class is ONE vreg-dense logaddexp, the order shift is a
    # sublane roll (XLU slot co-issues with the VPU/EUP work).
    inv_kt = 1.0 / (k * tau)
    R = 8 * pl.cdiv(k + 1, 8)
    sub_r = jax.lax.broadcasted_iota(jnp.int32, (R, n), 0)
    sig0 = jnp.where(sub_r == 0, 0.0, NEG).astype(jnp.float32)  # log sigma_j init

    def dp_step(i, sig):
        xi = x_ref[pl.ds(i, 1), :].astype(jnp.float32)          # (1, N) class row
        si = jnp.where(y == i, NEG, xi * inv_kt)                # GT masked out
        shifted = pltpu.roll(sig, shift=1, axis=0)              # shifted[j] = sig[j-1]
        shifted = jnp.where(sub_r == 0, NEG, shifted)           # sigma_{-1} = -inf
        return _logaddexp(sig, si + shifted)

    if c <= 64:                                   # small C: full static unroll
        sig = sig0
        for i in range(c):
            sig = dp_step(i, sig)
    else:                                         # large C: bounded unroll loop
        sig = jax.lax.fori_loop(0, c, dp_step, sig0, unroll=4)

    term_1 = sig[k:k + 1, :] + alpha / tau        # subsets not containing y
    term_2 = sig[k - 1:k, :] + x_gt * inv_kt      # subsets containing y
    d = term_1 - term_2                           # loss = tau * softplus(d)
    loss_smooth = tau * (jnp.maximum(d, 0.0) + jnp.log1p(jnp.exp(-jnp.abs(d))))

    out_ref[...] = jnp.where(hard, loss_hard, loss_smooth)


def smooth_topk_svm_forward(x, y, *, n_classes, k=5, tau=1.0, alpha=1.0,
                            thresh=1000.0, weight=None, reduction="mean",
                            block_cols=512):
    """Forward pass of SmoothTopkSVM. x: (B, C) or (N, C, ...) scores; y: int labels."""
    assert reduction in ("mean", "sum", "none")
    x_size = None
    if x.ndim > 2:
        xt = jnp.swapaxes(x, 1, -1)             # mirrors torch x.transpose(1, -1)
        x_size = xt.shape[:-1]
        x2 = xt.reshape(-1, xt.shape[-1])
        y2 = y.reshape(-1)
    else:
        x2, y2 = x, y
    b, c = x2.shape
    assert c == n_classes and c >= k + 1

    # Lane-major kernel layout: classes on sublanes, batch on lanes.  The
    # transpose + tail-only pad is one fused XLA copy; x keeps its native dtype
    # (f32 cast happens inside the kernel, so bf16 inputs halve HBM traffic).
    x_t = x2.T                                   # (C, B)

    bp128 = 128 * pl.cdiv(b, 128)
    block = min(block_cols, bp128)
    if bp128 > 128 and bp128 // block < 2:
        # keep >=2 grid steps so the 'parallel' axis can shard across the two
        # v7x TensorCores; block stays a multiple of 128 lanes.
        block = 128 * pl.cdiv(bp128 // 2, 128)
    bp = block * pl.cdiv(b, block)
    if bp != b:
        x_t = jnp.pad(x_t, ((0, 0), (0, bp - b)))   # pad only the ragged tail
        y2p = jnp.pad(y2, ((0, bp - b),))
    else:
        y2p = y2
    y2p = y2p.reshape(1, bp).astype(jnp.int32)

    kernel = functools.partial(_smooth_topk_svm_kernel,
                               k=k, tau=tau, alpha=alpha, thresh=thresh)
    losses = pl.pallas_call(
        kernel,
        out_shape=jax.ShapeDtypeStruct((1, bp), jnp.float32),
        grid=(bp // block,),
        in_specs=[pl.BlockSpec((c, block), lambda i: (0, i)),
                  pl.BlockSpec((1, block), lambda i: (0, i))],
        out_specs=pl.BlockSpec((1, block), lambda i: (0, i)),   # lane-dense output
        compiler_params=pltpu.CompilerParams(dimension_semantics=("parallel",)),
    )(x_t, y2p)

    out = losses[0, :b]
    if weight is not None:
        out = weight[y2.astype(jnp.int32)] * out
    if x_size is not None:
        out = out.reshape(x_size)
    if reduction == "mean":
        return out.mean()
    if reduction == "sum":
        return out.sum()
    return out


def _reference_loss(x, y, n_classes, k, tau, alpha, thresh):
    """Independent pure-JAX reference (explicit k-subset enumeration)."""
    if x.ndim > 2:
        xt = jnp.swapaxes(x, 1, -1)
        x2 = xt.reshape(-1, xt.shape[-1])
        y2 = y.reshape(-1)
    else:
        x2, y2 = x, y
    b, c = x2.shape
    x2 = x2.astype(jnp.float32)

    top = jax.lax.top_k(x2, k + 1)[0]
    hard = (top[:, k - 1] - top[:, k]) >= (k * tau * math.log(thresh))

    onehot = jax.nn.one_hot(y2, c, dtype=bool)
    x_gt = jnp.sum(jnp.where(onehot, x2, 0.0), axis=1)
    x_ng = jnp.where(onehot, -jnp.inf, x2)

    topk_ng = jax.lax.top_k(x_ng, k)[0]
    max1 = topk_ng.mean(axis=1) + alpha
    max2 = (topk_ng[:, :k - 1].sum(axis=1) + x_gt) / k
    loss_hard = jnp.maximum(max1 - max2, 0.0)

    s = x2 / (k * tau)
    subsets_k = jnp.array(list(itertools.combinations(range(c), k)), jnp.int32)
    subsets_k1 = jnp.array(list(itertools.combinations(range(c), k - 1)), jnp.int32)

    def log_sigma(subsets):
        sums = s[:, subsets].sum(axis=-1)                                  # (b, ns)
        contains = (subsets[None, :, :] == y2[:, None, None]).any(-1)      # (b, ns)
        return logsumexp(jnp.where(contains, -jnp.inf, sums), axis=1)

    t1 = log_sigma(subsets_k) + alpha / tau
    t2 = log_sigma(subsets_k1) + x_gt / (k * tau)
    loss_smooth = tau * (jnp.logaddexp(t1, t2) - t2)

    return jnp.where(hard, loss_hard, loss_smooth).mean()


if __name__ == "__main__":
    n_classes, k, tau, alpha, thresh = 16, 5, 1.0, 1.0, 1000.0
    N, H, W = 2, 16, 16  # -> B = N*H*W = 512 flattened rows -> 2 grid blocks

    key = jax.random.PRNGKey(0)
    kx, ky = jax.random.split(key)
    x = jax.random.normal(kx, (N, n_classes, H, W), jnp.float32) * 2.0
    # make a few pixels "hard" (huge gap between k-th and (k+1)-th score)
    x = x.at[:, :k, :, :4].add(100.0)
    y = jax.random.randint(ky, (N, H, W), 0, n_classes, dtype=jnp.int32)

    loss = smooth_topk_svm_forward(x, y, n_classes=n_classes, k=k, tau=tau,
                                   alpha=alpha, thresh=thresh, reduction="mean")
    loss = jax.block_until_ready(loss)

    ref = jax.block_until_ready(
        _reference_loss(x, y, n_classes, k, tau, alpha, thresh))

    assert bool(jnp.isfinite(loss)), f"non-finite loss {loss}"
    assert abs(float(loss) - float(ref)) <= 1e-3 * max(1.0, abs(float(ref))), (
        f"kernel {float(loss)} vs reference {float(ref)}")
    print("KERNEL_OK")
</pallas_src>

<mosaic_0001>
module attributes {stable_mosaic.version = 11 : i64} {
  func.func @_smooth_topk_svm_kernel(%arg0: i32, %arg1: memref<16x256xf32, #tpu.memory_space<vmem>>, %arg2: memref<1x256xi32, #tpu.memory_space<vmem>>, %arg3: memref<1x256xf32, #tpu.memory_space<vmem>>) attributes {dimension_semantics = [#tpu.dimension_semantics<parallel>], iteration_bounds = array<i64: 2>, scalar_prefetch = 0 : i64, scratch_operands = 0 : i64, tpu.core_type = #tpu.core_type<tc>, window_params = [{transform_indices = @transform_0, window_bounds = array<i64: 16, 256>}, {transform_indices = @transform_1, window_bounds = array<i64: 1, 256>}, {transform_indices = @transform_2, window_bounds = array<i64: 1, 256>}]} {
    %c0 = arith.constant 0 : index
    %c0_0 = arith.constant 0 : index
    %0 = vector.load %arg1[%c0, %c0_0] : memref<16x256xf32, #tpu.memory_space<vmem>>, vector<16x256xf32>
    %c0_1 = arith.constant 0 : index
    %c0_2 = arith.constant 0 : index
    %1 = vector.load %arg2[%c0_1, %c0_2] : memref<1x256xi32, #tpu.memory_space<vmem>>, vector<1x256xi32>
    %2 = tpu.iota {dimensions = array<i32: 0>} : vector<16x256xi32>
    %3 = vector.broadcast %1 : vector<1x256xi32> to vector<16x256xi32>
    %4 = arith.cmpi eq, %2, %3 : vector<16x256xi32>
    %cst = arith.constant 0.000000e+00 : f32
    %5 = vector.broadcast %cst : f32 to vector<16x256xf32>
    %6 = arith.select %4, %0, %5 : vector<16x256xi1>, vector<16x256xf32>
    %cst_3 = arith.constant dense<0.000000e+00> : vector<256xf32>
    %7 = vector.multi_reduction <add>, %6, %cst_3 [0] : vector<16x256xf32> to vector<256xf32>
    %8 = vector.shape_cast %7 : vector<256xf32> to vector<1x256xf32>
    %cst_4 = arith.constant -1.000000e+30 : f32
    %9 = vector.broadcast %cst_4 : f32 to vector<16x256xf32>
    %10 = arith.select %4, %9, %0 : vector<16x256xi1>, vector<16x256xf32>
    %cst_5 = arith.constant 0.000000e+00 : f32
    %11 = vector.broadcast %cst_5 : f32 to vector<1x256xf32>
    %cst_6 = arith.constant dense<0xFF800000> : vector<256xf32>
    %12 = vector.multi_reduction <maximumf>, %10, %cst_6 [0] : vector<16x256xf32> to vector<256xf32>
    %13 = vector.shape_cast %12 : vector<256xf32> to vector<1x256xf32>
    %14 = vector.broadcast %13 : vector<1x256xf32> to vector<16x256xf32>
    %15 = arith.cmpf oeq, %10, %14 : vector<16x256xf32>
    %c16_i32 = arith.constant 16 : i32
    %16 = vector.broadcast %c16_i32 : i32 to vector<16x256xi32>
    %17 = arith.select %15, %2, %16 : vector<16x256xi1>, vector<16x256xi32>
    %cst_7 = arith.constant dense<2147483647> : vector<256xi32>
    %18 = vector.multi_reduction <minsi>, %17, %cst_7 [0] : vector<16x256xi32> to vector<256xi32>
    %19 = vector.shape_cast %18 : vector<256xi32> to vector<1x256xi32>
    %20 = vector.broadcast %19 : vector<1x256xi32> to vector<16x256xi32>
    %21 = arith.cmpi eq, %2, %20 : vector<16x256xi32>
    %cst_8 = arith.constant -1.000000e+30 : f32
    %22 = vector.broadcast %cst_8 : f32 to vector<16x256xf32>
    %23 = arith.select %21, %22, %10 : vector<16x256xi1>, vector<16x256xf32>
    %24 = arith.addf %11, %13 : vector<1x256xf32>
    %cst_9 = arith.constant dense<0xFF800000> : vector<256xf32>
    %25 = vector.multi_reduction <maximumf>, %23, %cst_9 [0] : vector<16x256xf32> to vector<256xf32>
    %26 = vector.shape_cast %25 : vector<256xf32> to vector<1x256xf32>
    %27 = vector.broadcast %26 : vector<1x256xf32> to vector<16x256xf32>
    %28 = arith.cmpf oeq, %23, %27 : vector<16x256xf32>
    %c16_i32_10 = arith.constant 16 : i32
    %29 = vector.broadcast %c16_i32_10 : i32 to vector<16x256xi32>
    %30 = arith.select %28, %2, %29 : vector<16x256xi1>, vector<16x256xi32>
    %cst_11 = arith.constant dense<2147483647> : vector<256xi32>
    %31 = vector.multi_reduction <minsi>, %30, %cst_11 [0] : vector<16x256xi32> to vector<256xi32>
    %32 = vector.shape_cast %31 : vector<256xi32> to vector<1x256xi32>
    %33 = vector.broadcast %32 : vector<1x256xi32> to vector<16x256xi32>
    %34 = arith.cmpi eq, %2, %33 : vector<16x256xi32>
    %cst_12 = arith.constant -1.000000e+30 : f32
    %35 = vector.broadcast %cst_12 : f32 to vector<16x256xf32>
    %36 = arith.select %34, %35, %23 : vector<16x256xi1>, vector<16x256xf32>
    %37 = arith.addf %24, %26 : vector<1x256xf32>
    %cst_13 = arith.constant dense<0xFF800000> : vector<256xf32>
    %38 = vector.multi_reduction <maximumf>, %36, %cst_13 [0] : vector<16x256xf32> to vector<256xf32>
    %39 = vector.shape_cast %38 : vector<256xf32> to vector<1x256xf32>
    %40 = vector.broadcast %39 : vector<1x256xf32> to vector<16x256xf32>
    %41 = arith.cmpf oeq, %36, %40 : vector<16x256xf32>
    %c16_i32_14 = arith.constant 16 : i32
    %42 = vector.broadcast %c16_i32_14 : i32 to vector<16x256xi32>
    %43 = arith.select %41, %2, %42 : vector<16x256xi1>, vector<16x256xi32>
    %cst_15 = arith.constant dense<2147483647> : vector<256xi32>
    %44 = vector.multi_reduction <minsi>, %43, %cst_15 [0] : vector<16x256xi32> to vector<256xi32>
    %45 = vector.shape_cast %44 : vector<256xi32> to vector<1x256xi32>
    %46 = vector.broadcast %45 : vector<1x256xi32> to vector<16x256xi32>
    %47 = arith.cmpi eq, %2, %46 : vector<16x256xi32>
    %cst_16 = arith.constant -1.000000e+30 : f32
    %48 = vector.broadcast %cst_16 : f32 to vector<16x256xf32>
    %49 = arith.select %47, %48, %36 : vector<16x256xi1>, vector<16x256xf32>
    %50 = arith.addf %37, %39 : vector<1x256xf32>
    %cst_17 = arith.constant dense<0xFF800000> : vector<256xf32>
    %51 = vector.multi_reduction <maximumf>, %49, %cst_17 [0] : vector<16x256xf32> to vector<256xf32>
    %52 = vector.shape_cast %51 : vector<256xf32> to vector<1x256xf32>
    %53 = vector.broadcast %52 : vector<1x256xf32> to vector<16x256xf32>
    %54 = arith.cmpf oeq, %49, %53 : vector<16x256xf32>
    %c16_i32_18 = arith.constant 16 : i32
    %55 = vector.broadcast %c16_i32_18 : i32 to vector<16x256xi32>
    %56 = arith.select %54, %2, %55 : vector<16x256xi1>, vector<16x256xi32>
    %cst_19 = arith.constant dense<2147483647> : vector<256xi32>
    %57 = vector.multi_reduction <minsi>, %56, %cst_19 [0] : vector<16x256xi32> to vector<256xi32>
    %58 = vector.shape_cast %57 : vector<256xi32> to vector<1x256xi32>
    %59 = vector.broadcast %58 : vector<1x256xi32> to vector<16x256xi32>
    %60 = arith.cmpi eq, %2, %59 : vector<16x256xi32>
    %cst_20 = arith.constant -1.000000e+30 : f32
    %61 = vector.broadcast %cst_20 : f32 to vector<16x256xf32>
    %62 = arith.select %60, %61, %49 : vector<16x256xi1>, vector<16x256xf32>
    %63 = arith.addf %50, %52 : vector<1x256xf32>
    %cst_21 = arith.constant dense<0xFF800000> : vector<256xf32>
    %64 = vector.multi_reduction <maximumf>, %62, %cst_21 [0] : vector<16x256xf32> to vector<256xf32>
    %65 = vector.shape_cast %64 : vector<256xf32> to vector<1x256xf32>
    %66 = vector.broadcast %65 : vector<1x256xf32> to vector<16x256xf32>
    %67 = arith.cmpf oeq, %62, %66 : vector<16x256xf32>
    %c16_i32_22 = arith.constant 16 : i32
    %68 = vector.broadcast %c16_i32_22 : i32 to vector<16x256xi32>
    %69 = arith.select %67, %2, %68 : vector<16x256xi1>, vector<16x256xi32>
    %cst_23 = arith.constant dense<2147483647> : vector<256xi32>
    %70 = vector.multi_reduction <minsi>, %69, %cst_23 [0] : vector<16x256xi32> to vector<256xi32>
    %71 = vector.shape_cast %70 : vector<256xi32> to vector<1x256xi32>
    %72 = vector.broadcast %71 : vector<1x256xi32> to vector<16x256xi32>
    %73 = arith.cmpi eq, %2, %72 : vector<16x256xi32>
    %cst_24 = arith.constant -1.000000e+30 : f32
    %74 = vector.broadcast %cst_24 : f32 to vector<16x256xf32>
    %75 = arith.select %73, %74, %62 : vector<16x256xi1>, vector<16x256xf32>
    %76 = arith.addf %63, %65 : vector<1x256xf32>
    %cst_25 = arith.constant dense<0xFF800000> : vector<256xf32>
    %77 = vector.multi_reduction <maximumf>, %75, %cst_25 [0] : vector<16x256xf32> to vector<256xf32>
    %78 = vector.shape_cast %77 : vector<256xf32> to vector<1x256xf32>
    %c0_i32 = arith.constant 0 : i32
    %79 = vector.broadcast %c0_i32 : i32 to vector<1x256xi32>
    %80 = arith.cmpf ogt, %13, %8 : vector<1x256xf32>
    %81 = arith.extui %80 : vector<1x256xi1> to vector<1x256xi32>
    %82 = arith.addi %79, %81 : vector<1x256xi32>
    %83 = arith.cmpf ogt, %26, %8 : vector<1x256xf32>
    %84 = arith.extui %83 : vector<1x256xi1> to vector<1x256xi32>
    %85 = arith.addi %82, %84 : vector<1x256xi32>
    %86 = arith.cmpf ogt, %39, %8 : vector<1x256xf32>
    %87 = arith.extui %86 : vector<1x256xi1> to vector<1x256xi32>
    %88 = arith.addi %85, %87 : vector<1x256xi32>
    %89 = arith.cmpf ogt, %52, %8 : vector<1x256xf32>
    %90 = arith.extui %89 : vector<1x256xi1> to vector<1x256xi32>
    %91 = arith.addi %88, %90 : vector<1x256xi32>
    %92 = arith.cmpf ogt, %65, %8 : vector<1x256xf32>
    %93 = arith.extui %92 : vector<1x256xi1> to vector<1x256xi32>
    %94 = arith.addi %91, %93 : vector<1x256xi32>
    %95 = arith.cmpf ogt, %78, %8 : vector<1x256xf32>
    %96 = arith.extui %95 : vector<1x256xi1> to vector<1x256xi32>
    %97 = arith.addi %94, %96 : vector<1x256xi32>
    %c4_i32 = arith.constant 4 : i32
    %98 = vector.broadcast %c4_i32 : i32 to vector<1x256xi32>
    %99 = arith.cmpi sgt, %97, %98 : vector<1x256xi32>
    %c4_i32_26 = arith.constant 4 : i32
    %100 = vector.broadcast %c4_i32_26 : i32 to vector<1x256xi32>
    %101 = arith.cmpi eq, %97, %100 : vector<1x256xi32>
    %102 = arith.select %101, %8, %52 : vector<1x256xi1>, vector<1x256xf32>
    %103 = arith.select %99, %65, %102 : vector<1x256xi1>, vector<1x256xf32>
    %c5_i32 = arith.constant 5 : i32
    %104 = vector.broadcast %c5_i32 : i32 to vector<1x256xi32>
    %105 = arith.cmpi sgt, %97, %104 : vector<1x256xi32>
    %c5_i32_27 = arith.constant 5 : i32
    %106 = vector.broadcast %c5_i32_27 : i32 to vector<1x256xi32>
    %107 = arith.cmpi eq, %97, %106 : vector<1x256xi32>
    %108 = arith.select %107, %8, %65 : vector<1x256xi1>, vector<1x256xf32>
    %109 = arith.select %105, %78, %108 : vector<1x256xi1>, vector<1x256xf32>
    %110 = arith.subf %103, %109 : vector<1x256xf32>
    %cst_28 = arith.constant 34.5387764 : f32
    %111 = vector.broadcast %cst_28 : f32 to vector<1x256xf32>
    %112 = arith.cmpf oge, %110, %111 : vector<1x256xf32>
    %cst_29 = arith.constant 5.000000e+00 : f32
    %113 = vector.broadcast %cst_29 : f32 to vector<1x256xf32>
    %114 = arith.divf %76, %113 : vector<1x256xf32>
    %cst_30 = arith.constant 1.000000e+00 : f32
    %115 = vector.broadcast %cst_30 : f32 to vector<1x256xf32>
    %116 = arith.addf %114, %115 : vector<1x256xf32>
    %117 = arith.addf %63, %8 : vector<1x256xf32>
    %cst_31 = arith.constant 5.000000e+00 : f32
    %118 = vector.broadcast %cst_31 : f32 to vector<1x256xf32>
    %119 = arith.divf %117, %118 : vector<1x256xf32>
    %120 = arith.subf %116, %119 : vector<1x256xf32>
    %cst_32 = arith.constant 0.000000e+00 : f32
    %121 = vector.broadcast %cst_32 : f32 to vector<1x256xf32>
    %122 = arith.maximumf %120, %121 : vector<1x256xf32>
    %123 = tpu.iota {dimensions = array<i32: 0>} : vector<8x256xi32>
    %c0_i32_33 = arith.constant 0 : i32
    %124 = vector.broadcast %c0_i32_33 : i32 to vector<8x256xi32>
    %125 = arith.cmpi eq, %123, %124 : vector<8x256xi32>
    %cst_34 = arith.constant 0.000000e+00 : f32
    %cst_35 = arith.constant -1.000000e+30 : f32
    %126 = vector.broadcast %cst_34 : f32 to vector<8x256xf32>
    %127 = vector.broadcast %cst_35 : f32 to vector<8x256xf32>
    %128 = arith.select %125, %126, %127 : vector<8x256xi1>, vector<8x256xf32>
    %c0_36 = arith.constant 0 : index
    %c0_37 = arith.constant 0 : index
    %129 = vector.load %arg1[%c0_36, %c0_37] : memref<16x256xf32, #tpu.memory_space<vmem>>, vector<1x256xf32>
    %c0_i32_38 = arith.constant 0 : i32
    %130 = vector.broadcast %c0_i32_38 : i32 to vector<1x256xi32>
    %131 = arith.cmpi eq, %1, %130 : vector<1x256xi32>
    %cst_39 = arith.constant 2.000000e-01 : f32
    %132 = vector.broadcast %cst_39 : f32 to vector<1x256xf32>
    %133 = arith.mulf %129, %132 : vector<1x256xf32>
    %cst_40 = arith.constant -1.000000e+30 : f32
    %134 = vector.broadcast %cst_40 : f32 to vector<1x256xf32>
    %135 = arith.select %131, %134, %133 : vector<1x256xi1>, vector<1x256xf32>
    %c1_i32 = arith.constant 1 : i32
    %136 = tpu.dynamic_rotate %128 by %c1_i32 dim 0 : vector<8x256xf32>, i32 -> vector<8x256xf32>
    %c0_i32_41 = arith.constant 0 : i32
    %137 = vector.broadcast %c0_i32_41 : i32 to vector<8x256xi32>
    %138 = arith.cmpi eq, %123, %137 : vector<8x256xi32>
    %cst_42 = arith.constant -1.000000e+30 : f32
    %139 = vector.broadcast %cst_42 : f32 to vector<8x256xf32>
    %140 = arith.select %138, %139, %136 : vector<8x256xi1>, vector<8x256xf32>
    %141 = vector.broadcast %135 : vector<1x256xf32> to vector<8x256xf32>
    %142 = arith.addf %141, %140 : vector<8x256xf32>
    %143 = arith.maximumf %128, %142 : vector<8x256xf32>
    %144 = arith.subf %128, %142 : vector<8x256xf32>
    %145 = math.absf %144 : vector<8x256xf32>
    %cst_43 = arith.constant 0.000000e+00 : f32
    %146 = vector.broadcast %cst_43 : f32 to vector<8x256xf32>
    %147 = arith.subf %146, %145 : vector<8x256xf32>
    %148 = math.exp %147 : vector<8x256xf32>
    %149 = math.log1p %148 : vector<8x256xf32>
    %150 = arith.addf %143, %149 : vector<8x256xf32>
    %c1 = arith.constant 1 : index
    %c0_44 = arith.constant 0 : index
    %151 = vector.load %arg1[%c1, %c0_44] : memref<16x256xf32, #tpu.memory_space<vmem>>, vector<1x256xf32>
    %c1_i32_45 = arith.constant 1 : i32
    %152 = vector.broadcast %c1_i32_45 : i32 to vector<1x256xi32>
    %153 = arith.cmpi eq, %1, %152 : vector<1x256xi32>
    %cst_46 = arith.constant 2.000000e-01 : f32
    %154 = vector.broadcast %cst_46 : f32 to vector<1x256xf32>
    %155 = arith.mulf %151, %154 : vector<1x256xf32>
    %cst_47 = arith.constant -1.000000e+30 : f32
    %156 = vector.broadcast %cst_47 : f32 to vector<1x256xf32>
    %157 = arith.select %153, %156, %155 : vector<1x256xi1>, vector<1x256xf32>
    %c1_i32_48 = arith.constant 1 : i32
    %158 = tpu.dynamic_rotate %150 by %c1_i32_48 dim 0 : vector<8x256xf32>, i32 -> vector<8x256xf32>
    %c0_i32_49 = arith.constant 0 : i32
    %159 = vector.broadcast %c0_i32_49 : i32 to vector<8x256xi32>
    %160 = arith.cmpi eq, %123, %159 : vector<8x256xi32>
    %cst_50 = arith.constant -1.000000e+30 : f32
    %161 = vector.broadcast %cst_50 : f32 to vector<8x256xf32>
    %162 = arith.select %160, %161, %158 : vector<8x256xi1>, vector<8x256xf32>
    %163 = vector.broadcast %157 : vector<1x256xf32> to vector<8x256xf32>
    %164 = arith.addf %163, %162 : vector<8x256xf32>
    %165 = arith.maximumf %150, %164 : vector<8x256xf32>
    %166 = arith.subf %150, %164 : vector<8x256xf32>
    %167 = math.absf %166 : vector<8x256xf32>
    %cst_51 = arith.constant 0.000000e+00 : f32
    %168 = vector.broadcast %cst_51 : f32 to vector<8x256xf32>
    %169 = arith.subf %168, %167 : vector<8x256xf32>
    %170 = math.exp %169 : vector<8x256xf32>
    %171 = math.log1p %170 : vector<8x256xf32>
    %172 = arith.addf %165, %171 : vector<8x256xf32>
    %c2 = arith.constant 2 : index
    %c0_52 = arith.constant 0 : index
    %173 = vector.load %arg1[%c2, %c0_52] : memref<16x256xf32, #tpu.memory_space<vmem>>, vector<1x256xf32>
    %c2_i32 = arith.constant 2 : i32
    %174 = vector.broadcast %c2_i32 : i32 to vector<1x256xi32>
    %175 = arith.cmpi eq, %1, %174 : vector<1x256xi32>
    %cst_53 = arith.constant 2.000000e-01 : f32
    %176 = vector.broadcast %cst_53 : f32 to vector<1x256xf32>
    %177 = arith.mulf %173, %176 : vector<1x256xf32>
    %cst_54 = arith.constant -1.000000e+30 : f32
    %178 = vector.broadcast %cst_54 : f32 to vector<1x256xf32>
    %179 = arith.select %175, %178, %177 : vector<1x256xi1>, vector<1x256xf32>
    %c1_i32_55 = arith.constant 1 : i32
    %180 = tpu.dynamic_rotate %172 by %c1_i32_55 dim 0 : vector<8x256xf32>, i32 -> vector<8x256xf32>
    %c0_i32_56 = arith.constant 0 : i32
    %181 = vector.broadcast %c0_i32_56 : i32 to vector<8x256xi32>
    %182 = arith.cmpi eq, %123, %181 : vector<8x256xi32>
    %cst_57 = arith.constant -1.000000e+30 : f32
    %183 = vector.broadcast %cst_57 : f32 to vector<8x256xf32>
    %184 = arith.select %182, %183, %180 : vector<8x256xi1>, vector<8x256xf32>
    %185 = vector.broadcast %179 : vector<1x256xf32> to vector<8x256xf32>
    %186 = arith.addf %185, %184 : vector<8x256xf32>
    %187 = arith.maximumf %172, %186 : vector<8x256xf32>
    %188 = arith.subf %172, %186 : vector<8x256xf32>
    %189 = math.absf %188 : vector<8x256xf32>
    %cst_58 = arith.constant 0.000000e+00 : f32
    %190 = vector.broadcast %cst_58 : f32 to vector<8x256xf32>
    %191 = arith.subf %190, %189 : vector<8x256xf32>
    %192 = math.exp %191 : vector<8x256xf32>
    %193 = math.log1p %192 : vector<8x256xf32>
    %194 = arith.addf %187, %193 : vector<8x256xf32>
    %c3 = arith.constant 3 : index
    %c0_59 = arith.constant 0 : index
    %195 = vector.load %arg1[%c3, %c0_59] : memref<16x256xf32, #tpu.memory_space<vmem>>, vector<1x256xf32>
    %c3_i32 = arith.constant 3 : i32
    %196 = vector.broadcast %c3_i32 : i32 to vector<1x256xi32>
    %197 = arith.cmpi eq, %1, %196 : vector<1x256xi32>
    %cst_60 = arith.constant 2.000000e-01 : f32
    %198 = vector.broadcast %cst_60 : f32 to vector<1x256xf32>
    %199 = arith.mulf %195, %198 : vector<1x256xf32>
    %cst_61 = arith.constant -1.000000e+30 : f32
    %200 = vector.broadcast %cst_61 : f32 to vector<1x256xf32>
    %201 = arith.select %197, %200, %199 : vector<1x256xi1>, vector<1x256xf32>
    %c1_i32_62 = arith.constant 1 : i32
    %202 = tpu.dynamic_rotate %194 by %c1_i32_62 dim 0 : vector<8x256xf32>, i32 -> vector<8x256xf32>
    %c0_i32_63 = arith.constant 0 : i32
    %203 = vector.broadcast %c0_i32_63 : i32 to vector<8x256xi32>
    %204 = arith.cmpi eq, %123, %203 : vector<8x256xi32>
    %cst_64 = arith.constant -1.000000e+30 : f32
    %205 = vector.broadcast %cst_64 : f32 to vector<8x256xf32>
    %206 = arith.select %204, %205, %202 : vector<8x256xi1>, vector<8x256xf32>
    %207 = vector.broadcast %201 : vector<1x256xf32> to vector<8x256xf32>
    %208 = arith.addf %207, %206 : vector<8x256xf32>
    %209 = arith.maximumf %194, %208 : vector<8x256xf32>
    %210 = arith.subf %194, %208 : vector<8x256xf32>
    %211 = math.absf %210 : vector<8x256xf32>
    %cst_65 = arith.constant 0.000000e+00 : f32
    %212 = vector.broadcast %cst_65 : f32 to vector<8x256xf32>
    %213 = arith.subf %212, %211 : vector<8x256xf32>
    %214 = math.exp %213 : vector<8x256xf32>
    %215 = math.log1p %214 : vector<8x256xf32>
    %216 = arith.addf %209, %215 : vector<8x256xf32>
    %c4 = arith.constant 4 : index
    %c0_66 = arith.constant 0 : index
    %217 = vector.load %arg1[%c4, %c0_66] : memref<16x256xf32, #tpu.memory_space<vmem>>, vector<1x256xf32>
    %c4_i32_67 = arith.constant 4 : i32
    %218 = vector.broadcast %c4_i32_67 : i32 to vector<1x256xi32>
    %219 = arith.cmpi eq, %1, %218 : vector<1x256xi32>
    %cst_68 = arith.constant 2.000000e-01 : f32
    %220 = vector.broadcast %cst_68 : f32 to vector<1x256xf32>
    %221 = arith.mulf %217, %220 : vector<1x256xf32>
    %cst_69 = arith.constant -1.000000e+30 : f32
    %222 = vector.broadcast %cst_69 : f32 to vector<1x256xf32>
    %223 = arith.select %219, %222, %221 : vector<1x256xi1>, vector<1x256xf32>
    %c1_i32_70 = arith.constant 1 : i32
    %224 = tpu.dynamic_rotate %216 by %c1_i32_70 dim 0 : vector<8x256xf32>, i32 -> vector<8x256xf32>
    %c0_i32_71 = arith.constant 0 : i32
    %225 = vector.broadcast %c0_i32_71 : i32 to vector<8x256xi32>
    %226 = arith.cmpi eq, %123, %225 : vector<8x256xi32>
    %cst_72 = arith.constant -1.000000e+30 : f32
    %227 = vector.broadcast %cst_72 : f32 to vector<8x256xf32>
    %228 = arith.select %226, %227, %224 : vector<8x256xi1>, vector<8x256xf32>
    %229 = vector.broadcast %223 : vector<1x256xf32> to vector<8x256xf32>
    %230 = arith.addf %229, %228 : vector<8x256xf32>
    %231 = arith.maximumf %216, %230 : vector<8x256xf32>
    %232 = arith.subf %216, %230 : vector<8x256xf32>
    %233 = math.absf %232 : vector<8x256xf32>
    %cst_73 = arith.constant 0.000000e+00 : f32
    %234 = vector.broadcast %cst_73 : f32 to vector<8x256xf32>
    %235 = arith.subf %234, %233 : vector<8x256xf32>
    %236 = math.exp %235 : vector<8x256xf32>
    %237 = math.log1p %236 : vector<8x256xf32>
    %238 = arith.addf %231, %237 : vector<8x256xf32>
    %c5 = arith.constant 5 : index
    %c0_74 = arith.constant 0 : index
    %239 = vector.load %arg1[%c5, %c0_74] : memref<16x256xf32, #tpu.memory_space<vmem>>, vector<1x256xf32>
    %c5_i32_75 = arith.constant 5 : i32
    %240 = vector.broadcast %c5_i32_75 : i32 to vector<1x256xi32>
    %241 = arith.cmpi eq, %1, %240 : vector<1x256xi32>
    %cst_76 = arith.constant 2.000000e-01 : f32
    %242 = vector.broadcast %cst_76 : f32 to vector<1x256xf32>
    %243 = arith.mulf %239, %242 : vector<1x256xf32>
    %cst_77 = arith.constant -1.000000e+30 : f32
    %244 = vector.broadcast %cst_77 : f32 to vector<1x256xf32>
    %245 = arith.select %241, %244, %243 : vector<1x256xi1>, vector<1x256xf32>
    %c1_i32_78 = arith.constant 1 : i32
    %246 = tpu.dynamic_rotate %238 by %c1_i32_78 dim 0 : vector<8x256xf32>, i32 -> vector<8x256xf32>
    %c0_i32_79 = arith.constant 0 : i32
    %247 = vector.broadcast %c0_i32_79 : i32 to vector<8x256xi32>
    %248 = arith.cmpi eq, %123, %247 : vector<8x256xi32>
    %cst_80 = arith.constant -1.000000e+30 : f32
    %249 = vector.broadcast %cst_80 : f32 to vector<8x256xf32>
    %250 = arith.select %248, %249, %246 : vector<8x256xi1>, vector<8x256xf32>
    %251 = vector.broadcast %245 : vector<1x256xf32> to vector<8x256xf32>
    %252 = arith.addf %251, %250 : vector<8x256xf32>
    %253 = arith.maximumf %238, %252 : vector<8x256xf32>
    %254 = arith.subf %238, %252 : vector<8x256xf32>
    %255 = math.absf %254 : vector<8x256xf32>
    %cst_81 = arith.constant 0.000000e+00 : f32
    %256 = vector.broadcast %cst_81 : f32 to vector<8x256xf32>
    %257 = arith.subf %256, %255 : vector<8x256xf32>
    %258 = math.exp %257 : vector<8x256xf32>
    %259 = math.log1p %258 : vector<8x256xf32>
    %260 = arith.addf %253, %259 : vector<8x256xf32>
    %c6 = arith.constant 6 : index
    %c0_82 = arith.constant 0 : index
    %261 = vector.load %arg1[%c6, %c0_82] : memref<16x256xf32, #tpu.memory_space<vmem>>, vector<1x256xf32>
    %c6_i32 = arith.constant 6 : i32
    %262 = vector.broadcast %c6_i32 : i32 to vector<1x256xi32>
    %263 = arith.cmpi eq, %1, %262 : vector<1x256xi32>
    %cst_83 = arith.constant 2.000000e-01 : f32
    %264 = vector.broadcast %cst_83 : f32 to vector<1x256xf32>
    %265 = arith.mulf %261, %264 : vector<1x256xf32>
    %cst_84 = arith.constant -1.000000e+30 : f32
    %266 = vector.broadcast %cst_84 : f32 to vector<1x256xf32>
    %267 = arith.select %263, %266, %265 : vector<1x256xi1>, vector<1x256xf32>
    %c1_i32_85 = arith.constant 1 : i32
    %268 = tpu.dynamic_rotate %260 by %c1_i32_85 dim 0 : vector<8x256xf32>, i32 -> vector<8x256xf32>
    %c0_i32_86 = arith.constant 0 : i32
    %269 = vector.broadcast %c0_i32_86 : i32 to vector<8x256xi32>
    %270 = arith.cmpi eq, %123, %269 : vector<8x256xi32>
    %cst_87 = arith.constant -1.000000e+30 : f32
    %271 = vector.broadcast %cst_87 : f32 to vector<8x256xf32>
    %272 = arith.select %270, %271, %268 : vector<8x256xi1>, vector<8x256xf32>
    %273 = vector.broadcast %267 : vector<1x256xf32> to vector<8x256xf32>
    %274 = arith.addf %273, %272 : vector<8x256xf32>
    %275 = arith.maximumf %260, %274 : vector<8x256xf32>
    %276 = arith.subf %260, %274 : vector<8x256xf32>
    %277 = math.absf %276 : vector<8x256xf32>
    %cst_88 = arith.constant 0.000000e+00 : f32
    %278 = vector.broadcast %cst_88 : f32 to vector<8x256xf32>
    %279 = arith.subf %278, %277 : vector<8x256xf32>
    %280 = math.exp %279 : vector<8x256xf32>
    %281 = math.log1p %280 : vector<8x256xf32>
    %282 = arith.addf %275, %281 : vector<8x256xf32>
    %c7 = arith.constant 7 : index
    %c0_89 = arith.constant 0 : index
    %283 = vector.load %arg1[%c7, %c0_89] : memref<16x256xf32, #tpu.memory_space<vmem>>, vector<1x256xf32>
    %c7_i32 = arith.constant 7 : i32
    %284 = vector.broadcast %c7_i32 : i32 to vector<1x256xi32>
    %285 = arith.cmpi eq, %1, %284 : vector<1x256xi32>
    %cst_90 = arith.constant 2.000000e-01 : f32
    %286 = vector.broadcast %cst_90 : f32 to vector<1x256xf32>
    %287 = arith.mulf %283, %286 : vector<1x256xf32>
    %cst_91 = arith.constant -1.000000e+30 : f32
    %288 = vector.broadcast %cst_91 : f32 to vector<1x256xf32>
    %289 = arith.select %285, %288, %287 : vector<1x256xi1>, vector<1x256xf32>
    %c1_i32_92 = arith.constant 1 : i32
    %290 = tpu.dynamic_rotate %282 by %c1_i32_92 dim 0 : vector<8x256xf32>, i32 -> vector<8x256xf32>
    %c0_i32_93 = arith.constant 0 : i32
    %291 = vector.broadcast %c0_i32_93 : i32 to vector<8x256xi32>
    %292 = arith.cmpi eq, %123, %291 : vector<8x256xi32>
    %cst_94 = arith.constant -1.000000e+30 : f32
    %293 = vector.broadcast %cst_94 : f32 to vector<8x256xf32>
    %294 = arith.select %292, %293, %290 : vector<8x256xi1>, vector<8x256xf32>
    %295 = vector.broadcast %289 : vector<1x256xf32> to vector<8x256xf32>
    %296 = arith.addf %295, %294 : vector<8x256xf32>
    %297 = arith.maximumf %282, %296 : vector<8x256xf32>
    %298 = arith.subf %282, %296 : vector<8x256xf32>
    %299 = math.absf %298 : vector<8x256xf32>
    %cst_95 = arith.constant 0.000000e+00 : f32
    %300 = vector.broadcast %cst_95 : f32 to vector<8x256xf32>
    %301 = arith.subf %300, %299 : vector<8x256xf32>
    %302 = math.exp %301 : vector<8x256xf32>
    %303 = math.log1p %302 : vector<8x256xf32>
    %304 = arith.addf %297, %303 : vector<8x256xf32>
    %c8 = arith.constant 8 : index
    %c0_96 = arith.constant 0 : index
    %305 = vector.load %arg1[%c8, %c0_96] : memref<16x256xf32, #tpu.memory_space<vmem>>, vector<1x256xf32>
    %c8_i32 = arith.constant 8 : i32
    %306 = vector.broadcast %c8_i32 : i32 to vector<1x256xi32>
    %307 = arith.cmpi eq, %1, %306 : vector<1x256xi32>
    %cst_97 = arith.constant 2.000000e-01 : f32
    %308 = vector.broadcast %cst_97 : f32 to vector<1x256xf32>
    %309 = arith.mulf %305, %308 : vector<1x256xf32>
    %cst_98 = arith.constant -1.000000e+30 : f32
    %310 = vector.broadcast %cst_98 : f32 to vector<1x256xf32>
    %311 = arith.select %307, %310, %309 : vector<1x256xi1>, vector<1x256xf32>
    %c1_i32_99 = arith.constant 1 : i32
    %312 = tpu.dynamic_rotate %304 by %c1_i32_99 dim 0 : vector<8x256xf32>, i32 -> vector<8x256xf32>
    %c0_i32_100 = arith.constant 0 : i32
    %313 = vector.broadcast %c0_i32_100 : i32 to vector<8x256xi32>
    %314 = arith.cmpi eq, %123, %313 : vector<8x256xi32>
    %cst_101 = arith.constant -1.000000e+30 : f32
    %315 = vector.broadcast %cst_101 : f32 to vector<8x256xf32>
    %316 = arith.select %314, %315, %312 : vector<8x256xi1>, vector<8x256xf32>
    %317 = vector.broadcast %311 : vector<1x256xf32> to vector<8x256xf32>
    %318 = arith.addf %317, %316 : vector<8x256xf32>
    %319 = arith.maximumf %304, %318 : vector<8x256xf32>
    %320 = arith.subf %304, %318 : vector<8x256xf32>
    %321 = math.absf %320 : vector<8x256xf32>
    %cst_102 = arith.constant 0.000000e+00 : f32
    %322 = vector.broadcast %cst_102 : f32 to vector<8x256xf32>
    %323 = arith.subf %322, %321 : vector<8x256xf32>
    %324 = math.exp %323 : vector<8x256xf32>
    %325 = math.log1p %324 : vector<8x256xf32>
    %326 = arith.addf %319, %325 : vector<8x256xf32>
    %c9 = arith.constant 9 : index
    %c0_103 = arith.constant 0 : index
    %327 = vector.load %arg1[%c9, %c0_103] : memref<16x256xf32, #tpu.memory_space<vmem>>, vector<1x256xf32>
    %c9_i32 = arith.constant 9 : i32
    %328 = vector.broadcast %c9_i32 : i32 to vector<1x256xi32>
    %329 = arith.cmpi eq, %1, %328 : vector<1x256xi32>
    %cst_104 = arith.constant 2.000000e-01 : f32
    %330 = vector.broadcast %cst_104 : f32 to vector<1x256xf32>
    %331 = arith.mulf %327, %330 : vector<1x256xf32>
    %cst_105 = arith.constant -1.000000e+30 : f32
    %332 = vector.broadcast %cst_105 : f32 to vector<1x256xf32>
    %333 = arith.select %329, %332, %331 : vector<1x256xi1>, vector<1x256xf32>
    %c1_i32_106 = arith.constant 1 : i32
    %334 = tpu.dynamic_rotate %326 by %c1_i32_106 dim 0 : vector<8x256xf32>, i32 -> vector<8x256xf32>
    %c0_i32_107 = arith.constant 0 : i32
    %335 = vector.broadcast %c0_i32_107 : i32 to vector<8x256xi32>
    %336 = arith.cmpi eq, %123, %335 : vector<8x256xi32>
    %cst_108 = arith.constant -1.000000e+30 : f32
    %337 = vector.broadcast %cst_108 : f32 to vector<8x256xf32>
    %338 = arith.select %336, %337, %334 : vector<8x256xi1>, vector<8x256xf32>
    %339 = vector.broadcast %333 : vector<1x256xf32> to vector<8x256xf32>
    %340 = arith.addf %339, %338 : vector<8x256xf32>
    %341 = arith.maximumf %326, %340 : vector<8x256xf32>
    %342 = arith.subf %326, %340 : vector<8x256xf32>
    %343 = math.absf %342 : vector<8x256xf32>
    %cst_109 = arith.constant 0.000000e+00 : f32
    %344 = vector.broadcast %cst_109 : f32 to vector<8x256xf32>
    %345 = arith.subf %344, %343 : vector<8x256xf32>
    %346 = math.exp %345 : vector<8x256xf32>
    %347 = math.log1p %346 : vector<8x256xf32>
    %348 = arith.addf %341, %347 : vector<8x256xf32>
    %c10 = arith.constant 10 : index
    %c0_110 = arith.constant 0 : index
    %349 = vector.load %arg1[%c10, %c0_110] : memref<16x256xf32, #tpu.memory_space<vmem>>, vector<1x256xf32>
    %c10_i32 = arith.constant 10 : i32
    %350 = vector.broadcast %c10_i32 : i32 to vector<1x256xi32>
    %351 = arith.cmpi eq, %1, %350 : vector<1x256xi32>
    %cst_111 = arith.constant 2.000000e-01 : f32
    %352 = vector.broadcast %cst_111 : f32 to vector<1x256xf32>
    %353 = arith.mulf %349, %352 : vector<1x256xf32>
    %cst_112 = arith.constant -1.000000e+30 : f32
    %354 = vector.broadcast %cst_112 : f32 to vector<1x256xf32>
    %355 = arith.select %351, %354, %353 : vector<1x256xi1>, vector<1x256xf32>
    %c1_i32_113 = arith.constant 1 : i32
    %356 = tpu.dynamic_rotate %348 by %c1_i32_113 dim 0 : vector<8x256xf32>, i32 -> vector<8x256xf32>
    %c0_i32_114 = arith.constant 0 : i32
    %357 = vector.broadcast %c0_i32_114 : i32 to vector<8x256xi32>
    %358 = arith.cmpi eq, %123, %357 : vector<8x256xi32>
    %cst_115 = arith.constant -1.000000e+30 : f32
    %359 = vector.broadcast %cst_115 : f32 to vector<8x256xf32>
    %360 = arith.select %358, %359, %356 : vector<8x256xi1>, vector<8x256xf32>
    %361 = vector.broadcast %355 : vector<1x256xf32> to vector<8x256xf32>
    %362 = arith.addf %361, %360 : vector<8x256xf32>
    %363 = arith.maximumf %348, %362 : vector<8x256xf32>
    %364 = arith.subf %348, %362 : vector<8x256xf32>
    %365 = math.absf %364 : vector<8x256xf32>
    %cst_116 = arith.constant 0.000000e+00 : f32
    %366 = vector.broadcast %cst_116 : f32 to vector<8x256xf32>
    %367 = arith.subf %366, %365 : vector<8x256xf32>
    %368 = math.exp %367 : vector<8x256xf32>
    %369 = math.log1p %368 : vector<8x256xf32>
    %370 = arith.addf %363, %369 : vector<8x256xf32>
    %c11 = arith.constant 11 : index
    %c0_117 = arith.constant 0 : index
    %371 = vector.load %arg1[%c11, %c0_117] : memref<16x256xf32, #tpu.memory_space<vmem>>, vector<1x256xf32>
    %c11_i32 = arith.constant 11 : i32
    %372 = vector.broadcast %c11_i32 : i32 to vector<1x256xi32>
    %373 = arith.cmpi eq, %1, %372 : vector<1x256xi32>
    %cst_118 = arith.constant 2.000000e-01 : f32
    %374 = vector.broadcast %cst_118 : f32 to vector<1x256xf32>
    %375 = arith.mulf %371, %374 : vector<1x256xf32>
    %cst_119 = arith.constant -1.000000e+30 : f32
    %376 = vector.broadcast %cst_119 : f32 to vector<1x256xf32>
    %377 = arith.select %373, %376, %375 : vector<1x256xi1>, vector<1x256xf32>
    %c1_i32_120 = arith.constant 1 : i32
    %378 = tpu.dynamic_rotate %370 by %c1_i32_120 dim 0 : vector<8x256xf32>, i32 -> vector<8x256xf32>
    %c0_i32_121 = arith.constant 0 : i32
    %379 = vector.broadcast %c0_i32_121 : i32 to vector<8x256xi32>
    %380 = arith.cmpi eq, %123, %379 : vector<8x256xi32>
    %cst_122 = arith.constant -1.000000e+30 : f32
    %381 = vector.broadcast %cst_122 : f32 to vector<8x256xf32>
    %382 = arith.select %380, %381, %378 : vector<8x256xi1>, vector<8x256xf32>
    %383 = vector.broadcast %377 : vector<1x256xf32> to vector<8x256xf32>
    %384 = arith.addf %383, %382 : vector<8x256xf32>
    %385 = arith.maximumf %370, %384 : vector<8x256xf32>
    %386 = arith.subf %370, %384 : vector<8x256xf32>
    %387 = math.absf %386 : vector<8x256xf32>
    %cst_123 = arith.constant 0.000000e+00 : f32
    %388 = vector.broadcast %cst_123 : f32 to vector<8x256xf32>
    %389 = arith.subf %388, %387 : vector<8x256xf32>
    %390 = math.exp %389 : vector<8x256xf32>
    %391 = math.log1p %390 : vector<8x256xf32>
    %392 = arith.addf %385, %391 : vector<8x256xf32>
    %c12 = arith.constant 12 : index
    %c0_124 = arith.constant 0 : index
    %393 = vector.load %arg1[%c12, %c0_124] : memref<16x256xf32, #tpu.memory_space<vmem>>, vector<1x256xf32>
    %c12_i32 = arith.constant 12 : i32
    %394 = vector.broadcast %c12_i32 : i32 to vector<1x256xi32>
    %395 = arith.cmpi eq, %1, %394 : vector<1x256xi32>
    %cst_125 = arith.constant 2.000000e-01 : f32
    %396 = vector.broadcast %cst_125 : f32 to vector<1x256xf32>
    %397 = arith.mulf %393, %396 : vector<1x256xf32>
    %cst_126 = arith.constant -1.000000e+30 : f32
    %398 = vector.broadcast %cst_126 : f32 to vector<1x256xf32>
    %399 = arith.select %395, %398, %397 : vector<1x256xi1>, vector<1x256xf32>
    %c1_i32_127 = arith.constant 1 : i32
    %400 = tpu.dynamic_rotate %392 by %c1_i32_127 dim 0 : vector<8x256xf32>, i32 -> vector<8x256xf32>
    %c0_i32_128 = arith.constant 0 : i32
    %401 = vector.broadcast %c0_i32_128 : i32 to vector<8x256xi32>
    %402 = arith.cmpi eq, %123, %401 : vector<8x256xi32>
    %cst_129 = arith.constant -1.000000e+30 : f32
    %403 = vector.broadcast %cst_129 : f32 to vector<8x256xf32>
    %404 = arith.select %402, %403, %400 : vector<8x256xi1>, vector<8x256xf32>
    %405 = vector.broadcast %399 : vector<1x256xf32> to vector<8x256xf32>
    %406 = arith.addf %405, %404 : vector<8x256xf32>
    %407 = arith.maximumf %392, %406 : vector<8x256xf32>
    %408 = arith.subf %392, %406 : vector<8x256xf32>
    %409 = math.absf %408 : vector<8x256xf32>
    %cst_130 = arith.constant 0.000000e+00 : f32
    %410 = vector.broadcast %cst_130 : f32 to vector<8x256xf32>
    %411 = arith.subf %410, %409 : vector<8x256xf32>
    %412 = math.exp %411 : vector<8x256xf32>
    %413 = math.log1p %412 : vector<8x256xf32>
    %414 = arith.addf %407, %413 : vector<8x256xf32>
    %c13 = arith.constant 13 : index
    %c0_131 = arith.constant 0 : index
    %415 = vector.load %arg1[%c13, %c0_131] : memref<16x256xf32, #tpu.memory_space<vmem>>, vector<1x256xf32>
    %c13_i32 = arith.constant 13 : i32
    %416 = vector.broadcast %c13_i32 : i32 to vector<1x256xi32>
    %417 = arith.cmpi eq, %1, %416 : vector<1x256xi32>
    %cst_132 = arith.constant 2.000000e-01 : f32
    %418 = vector.broadcast %cst_132 : f32 to vector<1x256xf32>
    %419 = arith.mulf %415, %418 : vector<1x256xf32>
    %cst_133 = arith.constant -1.000000e+30 : f32
    %420 = vector.broadcast %cst_133 : f32 to vector<1x256xf32>
    %421 = arith.select %417, %420, %419 : vector<1x256xi1>, vector<1x256xf32>
    %c1_i32_134 = arith.constant 1 : i32
    %422 = tpu.dynamic_rotate %414 by %c1_i32_134 dim 0 : vector<8x256xf32>, i32 -> vector<8x256xf32>
    %c0_i32_135 = arith.constant 0 : i32
    %423 = vector.broadcast %c0_i32_135 : i32 to vector<8x256xi32>
    %424 = arith.cmpi eq, %123, %423 : vector<8x256xi32>
    %cst_136 = arith.constant -1.000000e+30 : f32
    %425 = vector.broadcast %cst_136 : f32 to vector<8x256xf32>
    %426 = arith.select %424, %425, %422 : vector<8x256xi1>, vector<8x256xf32>
    %427 = vector.broadcast %421 : vector<1x256xf32> to vector<8x256xf32>
    %428 = arith.addf %427, %426 : vector<8x256xf32>
    %429 = arith.maximumf %414, %428 : vector<8x256xf32>
    %430 = arith.subf %414, %428 : vector<8x256xf32>
    %431 = math.absf %430 : vector<8x256xf32>
    %cst_137 = arith.constant 0.000000e+00 : f32
    %432 = vector.broadcast %cst_137 : f32 to vector<8x256xf32>
    %433 = arith.subf %432, %431 : vector<8x256xf32>
    %434 = math.exp %433 : vector<8x256xf32>
    %435 = math.log1p %434 : vector<8x256xf32>
    %436 = arith.addf %429, %435 : vector<8x256xf32>
    %c14 = arith.constant 14 : index
    %c0_138 = arith.constant 0 : index
    %437 = vector.load %arg1[%c14, %c0_138] : memref<16x256xf32, #tpu.memory_space<vmem>>, vector<1x256xf32>
    %c14_i32 = arith.constant 14 : i32
    %438 = vector.broadcast %c14_i32 : i32 to vector<1x256xi32>
    %439 = arith.cmpi eq, %1, %438 : vector<1x256xi32>
    %cst_139 = arith.constant 2.000000e-01 : f32
    %440 = vector.broadcast %cst_139 : f32 to vector<1x256xf32>
    %441 = arith.mulf %437, %440 : vector<1x256xf32>
    %cst_140 = arith.constant -1.000000e+30 : f32
    %442 = vector.broadcast %cst_140 : f32 to vector<1x256xf32>
    %443 = arith.select %439, %442, %441 : vector<1x256xi1>, vector<1x256xf32>
    %c1_i32_141 = arith.constant 1 : i32
    %444 = tpu.dynamic_rotate %436 by %c1_i32_141 dim 0 : vector<8x256xf32>, i32 -> vector<8x256xf32>
    %c0_i32_142 = arith.constant 0 : i32
    %445 = vector.broadcast %c0_i32_142 : i32 to vector<8x256xi32>
    %446 = arith.cmpi eq, %123, %445 : vector<8x256xi32>
    %cst_143 = arith.constant -1.000000e+30 : f32
    %447 = vector.broadcast %cst_143 : f32 to vector<8x256xf32>
    %448 = arith.select %446, %447, %444 : vector<8x256xi1>, vector<8x256xf32>
    %449 = vector.broadcast %443 : vector<1x256xf32> to vector<8x256xf32>
    %450 = arith.addf %449, %448 : vector<8x256xf32>
    %451 = arith.maximumf %436, %450 : vector<8x256xf32>
    %452 = arith.subf %436, %450 : vector<8x256xf32>
    %453 = math.absf %452 : vector<8x256xf32>
    %cst_144 = arith.constant 0.000000e+00 : f32
    %454 = vector.broadcast %cst_144 : f32 to vector<8x256xf32>
    %455 = arith.subf %454, %453 : vector<8x256xf32>
    %456 = math.exp %455 : vector<8x256xf32>
    %457 = math.log1p %456 : vector<8x256xf32>
    %458 = arith.addf %451, %457 : vector<8x256xf32>
    %c15 = arith.constant 15 : index
    %c0_145 = arith.constant 0 : index
    %459 = vector.load %arg1[%c15, %c0_145] : memref<16x256xf32, #tpu.memory_space<vmem>>, vector<1x256xf32>
    %c15_i32 = arith.constant 15 : i32
    %460 = vector.broadcast %c15_i32 : i32 to vector<1x256xi32>
    %461 = arith.cmpi eq, %1, %460 : vector<1x256xi32>
    %cst_146 = arith.constant 2.000000e-01 : f32
    %462 = vector.broadcast %cst_146 : f32 to vector<1x256xf32>
    %463 = arith.mulf %459, %462 : vector<1x256xf32>
    %cst_147 = arith.constant -1.000000e+30 : f32
    %464 = vector.broadcast %cst_147 : f32 to vector<1x256xf32>
    %465 = arith.select %461, %464, %463 : vector<1x256xi1>, vector<1x256xf32>
    %c1_i32_148 = arith.constant 1 : i32
    %466 = tpu.dynamic_rotate %458 by %c1_i32_148 dim 0 : vector<8x256xf32>, i32 -> vector<8x256xf32>
    %c0_i32_149 = arith.constant 0 : i32
    %467 = vector.broadcast %c0_i32_149 : i32 to vector<8x256xi32>
    %468 = arith.cmpi eq, %123, %467 : vector<8x256xi32>
    %cst_150 = arith.constant -1.000000e+30 : f32
    %469 = vector.broadcast %cst_150 : f32 to vector<8x256xf32>
    %470 = arith.select %468, %469, %466 : vector<8x256xi1>, vector<8x256xf32>
    %471 = vector.broadcast %465 : vector<1x256xf32> to vector<8x256xf32>
    %472 = arith.addf %471, %470 : vector<8x256xf32>
    %473 = arith.maximumf %458, %472 : vector<8x256xf32>
    %474 = arith.subf %458, %472 : vector<8x256xf32>
    %475 = math.absf %474 : vector<8x256xf32>
    %cst_151 = arith.constant 0.000000e+00 : f32
    %476 = vector.broadcast %cst_151 : f32 to vector<8x256xf32>
    %477 = arith.subf %476, %475 : vector<8x256xf32>
    %478 = math.exp %477 : vector<8x256xf32>
    %479 = math.log1p %478 : vector<8x256xf32>
    %480 = arith.addf %473, %479 : vector<8x256xf32>
    %481 = vector.extract_strided_slice %480 {offsets = [5, 0], sizes = [1, 256], strides = [1, 1]} : vector<8x256xf32> to vector<1x256xf32>
    %cst_152 = arith.constant 1.000000e+00 : f32
    %482 = vector.broadcast %cst_152 : f32 to vector<1x256xf32>
    %483 = arith.addf %481, %482 : vector<1x256xf32>
    %484 = vector.extract_strided_slice %480 {offsets = [4, 0], sizes = [1, 256], strides = [1, 1]} : vector<8x256xf32> to vector<1x256xf32>
    %cst_153 = arith.constant 2.000000e-01 : f32
    %485 = vector.broadcast %cst_153 : f32 to vector<1x256xf32>
    %486 = arith.mulf %8, %485 : vector<1x256xf32>
    %487 = arith.addf %484, %486 : vector<1x256xf32>
    %488 = arith.subf %483, %487 : vector<1x256xf32>
    %cst_154 = arith.constant 0.000000e+00 : f32
    %489 = vector.broadcast %cst_154 : f32 to vector<1x256xf32>
    %490 = arith.maximumf %488, %489 : vector<1x256xf32>
    %491 = math.absf %488 : vector<1x256xf32>
    %cst_155 = arith.constant 0.000000e+00 : f32
    %492 = vector.broadcast %cst_155 : f32 to vector<1x256xf32>
    %493 = arith.subf %492, %491 : vector<1x256xf32>
    %494 = math.exp %493 : vector<1x256xf32>
    %495 = math.log1p %494 : vector<1x256xf32>
    %496 = arith.addf %490, %495 : vector<1x256xf32>
    %cst_156 = arith.constant 1.000000e+00 : f32
    %497 = vector.broadcast %cst_156 : f32 to vector<1x256xf32>
    %498 = arith.mulf %497, %496 : vector<1x256xf32>
    %499 = arith.select %112, %122, %498 : vector<1x256xi1>, vector<1x256xf32>
    %c0_157 = arith.constant 0 : index
    %c0_158 = arith.constant 0 : index
    %500 = vector.load %arg3[%c0_157, %c0_158] : memref<1x256xf32, #tpu.memory_space<vmem>>, vector<1x256xf32>
    tpu.vector_store %arg3[%c0_157, %c0_158], %499 {strides = array<i32>} : memref<1x256xf32, #tpu.memory_space<vmem>>, vector<1x256xf32>,
    return
  }
  func.func @transform_0(%arg0: i32) -> (i32, i32) {
    %c0_i32 = arith.constant 0 : i32
    %c0_i32_0 = arith.constant 0 : i32
    return %c0_i32, %arg0 : i32, i32
  }
  func.func @transform_1(%arg0: i32) -> (i32, i32) {
    %c0_i32 = arith.constant 0 : i32
    %c0_i32_0 = arith.constant 0 : i32
    return %c0_i32, %arg0 : i32, i32
  }
  func.func @transform_2(%arg0: i32) -> (i32, i32) {
    %c0_i32 = arith.constant 0 : i32
    %c0_i32_0 = arith.constant 0 : i32
    return %c0_i32, %arg0 : i32, i32
  }
}

</mosaic_0001>

<bundles_post_ra>
// kernel: tpu_custom_call.1
= control target key start
LH: loop header
LB: loop body
LE: loop exit
PB: predicated region body
PF: predicated region fallthrough
CT: control target
= control target key end

     0   :  { %7 = vsyncpa [#allocation3], 0  ;;  %s2701_s0 = inlined_call_operand.hbm [shape: f32[16,512], index: 0, kind: input, shape index: {}]   ;;  %s2702_s1 = inlined_call_operand.hbm [shape: s32[1,512], index: 1, kind: input, shape index: {}]   ;;  %s2703_s2 = inlined_call_operand.hbm [shape: f32[1,512], index: 2, kind: output, shape index: {}]  }
   0x1   :  { %9 = vsyncpa [#allocation3 + $0x1], 0 }
   0x2   :  { %10 = vsyncpa [#allocation6], 0 }
   0x3   :  { %12 = vsyncpa [#allocation6 + $0x1], 0 }
   0x4   :  { %13 = vsyncpa [#allocation4], 0 }
   0x5   :  { %15 = vsyncpa [#allocation4 + $0x1], 0  ;;  %s1914_s9 = smov 0   ;;  %s1916_s10 = smov 0  }
   0x6   :  { %s1918_s11 = smov 0   ;;  %s1920_s12 = smov 0  }
   0x7 LB: > { %s1935_s13 = sadd.s32 4294967295, %s1891_s12   ;;  %s1533_s14 = sadd.s32 4294967294, %s1891_s12   ;;  %s1891_s12 = sphi %s1920_s12, %s2723_s12   ;;  %s1887_s11 = sphi %s1918_s11, %s2722_s11   ;;  %s1883_s10 = sphi %s1916_s10, %s2721_s10   ;;  %s1879_s9 = sphi %s1914_s9, %s2720_s9  }
   0x8   : > { %s1939_s15 = sadd.s32 1, %s1891_s12   ;;  %s28_s16 = sadd.s32 1, %s1887_s11 }
   0x9   : > { %s25_s17 = ssub.s32 %s1891_s12, %s1939_s15  ;;  %p35_p0 = scmp.ne.s32.totalorder %s1887_s11, %s1883_s10 }
   0xa   : > { %p26_p1 = scmp.eq.s32.totalorder %s25_s17, 0  ;;  %p36_p2 = scmp.eq.s32.totalorder %s1891_s12, 0 }
   0xb   : > { %p41_p3 = scmp.ne.s32.totalorder %s1883_s10, %s1879_s9  ;;  %p42_p4 = scmp.eq.s32.totalorder %s1935_s13, 0 }
   0xc   : > { %s1951_s18 = scalar_select %p26_p1, %s1887_s11, %s28_s16  }
   0xd   : > { %p1953_p5 = por %p36_p2, %p35_p0  ;;  %p1957_p6 = por %p42_p4, %p41_p3 }
   0xe   : > { %p91_p7 = scmp.eq.s32.totalorder %s1935_s13, 1  ;;  %p97_p8 = scmp.eq.s32.totalorder %s1533_s14, 1 }
   0xf   : > { %p1535_p9 = scmp.ge.s32.totalorder %s1891_s12, 2  ;;  %p1582_p10 = scmp.lt.s32.totalorder %s1891_s12, 2 }
  0x10   : > { %p1964_p11 = por %p91_p7, %p35_p0  ;;  %p1968_p12 = por %p97_p8, %p41_p3 }
  0x11   : > { %s1973_s23 = sand.u32 1, %s1887_s11   ;;  %s1564_s24 = sshll.u32 %s1891_s12, 4 }
  0x12   : > { %s1536_s25 = sshll.u32 %s1973_s23, 5  ;;  %s126_s28 = scalar_lea.hbm %s2701_s0, %s1564_s24 }
  0x13   : > { %s127_s29 = sshll.u32 %s126_s28, 4  ;;  %s121_s30 = scalar_lea.vmem [#allocation2], %s1536_s25  ;;  %s128_s29 = int_to_ptr.hbm [resolvable:$true] %s127_s29 }
  0x14   : > { %s129_s3 = sshll.u32 %s121_s30, 4  ;;  %p1982_p13 = pnand %p1582_p10, %p1953_p5  ;;  %s130_s3 = int_to_ptr.vmem [resolvable:$true] %s129_s3 }
  0x15   : > { %p1541_p0 = scmp.ge.s32.totalorder %s1891_s12, 1  ;;  %s118_s5 = scalar_lea.sflag [#allocation3], %s1973_s23 }
  0x16   : > { %s1761_s6 = sshra.s32 %s128_s29, 4  ;;  %p1765_p2 = pneg %p1982_p13  ;;  %s1762_s6 = int_to_ptr.hbm [resolvable:$true] %s1761_s6 }
  0x17   : > { %s1763_s7 = scalar_lea.hbm %s1762_s6, 32  ;;  %s1768_s16 = scalar_lea.hbm %s2701_s0, 64 }
  0x18   : > { %p1764_p1 = scmp.ne.s32.totalorder %s1762_s6, %s1763_s7  ;;  %p1769_p5 = scmp.lt.s32.totalorder %s1762_s6, %s2701_s0 }
  0x19   : > { %p1770_p7 = scmp.lt.s32.totalorder %s1768_s16, %s1763_s7 }
  0x1a   : > { %p1766_p3 = pnand %p1765_p2, %p1764_p1 }
  0x1b   : > { %p1771_p8 = por %p1770_p7, %p1769_p5 }
  0x1c   : > { %p1767_p4 = pneg %p1766_p3 }
  0x1e   : > { %p1772_p10 = pnand %p1771_p8, %p1767_p4 }
  0x20   : > { %1775 = shalt.err (!%p1772_p10)
}
  0x21   : > { %s1893_s24 = smov 512   ;;  %s1894_s25 = smov 256  }
  0x22   : > { %s1895_s26 = smov 16   ;;  %p156_p1 = scmp.lt.s32.totalorder %s1891_s12, 3 }
  0x23   : > { %1574 = dma.hbm_to_vmem [thread:$0]  (!%p1982_p13), %s128_s29, 512, %s130_s3, %s118_s5, %s1893_s24, %s1894_s25, %s1895_s26  }
  0x24   : > { %s1539_s27 = sshll.u32 %s1973_s23, 1  ;;  %s1540_s28 = sshll.u32 %s1891_s12, 1 }
  0x25   : > { %p2006_p3 = pnand %p1541_p0, %p156_p1  ;;  %s147_s8 = scalar_lea.hbm %s2702_s1, %s1540_s28 }
  0x26   : > { %s143_s14 = scalar_lea.vmem [#allocation5], %s1539_s27  ;;  %s149_s17 = sshll.u32 %s147_s8, 4  ;;  %s150_s17 = int_to_ptr.hbm [resolvable:$true] %s149_s17 }
  0x27   : > { %s151_s16 = sshll.u32 %s143_s14, 4  ;;  %s140_s19 = scalar_lea.sflag [#allocation6], %s1973_s23  ;;  %s152_s16 = int_to_ptr.vmem [resolvable:$true] %s151_s16 }
  0x28   : > { %s1791_s29 = sshra.s32 %s150_s17, 4  ;;  %s1798_s25 = scalar_lea.hbm %s2702_s1, 4  ;;  %s1792_s29 = int_to_ptr.hbm [resolvable:$true] %s1791_s29 }
  0x29   : > { %s1793_s3 = scalar_lea.hbm %s1792_s29, 2  ;;  %p1799_p7 = scmp.lt.s32.totalorder %s1792_s29, %s2702_s1 }
  0x2a   : > { %p1794_p4 = scmp.ne.s32.totalorder %s1792_s29, %s1793_s3  ;;  %p1800_p8 = scmp.lt.s32.totalorder %s1798_s25, %s1793_s3 }
  0x2c   : > { %p1796_p0 = pnand %p1794_p4, %p1765_p2  ;;  %p1801_p10 = por %p1800_p8, %p1799_p7 }
  0x2e   : > { %p1797_p5 = pneg %p1796_p0 }
  0x30   : > { %p1802_p1 = pnand %p1801_p10, %p1797_p5 }
  0x32   : > { %1805 = shalt.err (!%p1802_p1)
}
  0x33   : > { %1577 = dma.hbm_to_vmem [thread:$0]  (!%p1982_p13), %s150_s17, 32, %s152_s16, %s140_s19  }
  0x34   : > { %160 = sbr.rel (%p2006_p3) target bundleno = 657 (0x291), region = 28  ;;  %s2028_s23 = sand.u32 (!%p2006_p3), 1, %s1883_s10  }
  0x35   : > { %s1542_s27 = sshll.u32 (!%p2006_p3), %s2028_s23, 5  ;;  %s163_s6 = scalar_lea.sflag (!%p2006_p3), [#allocation3], %s2028_s23 }
  0x36   : > { %s2032_s7 = scalar_lea.vmem (!%p2006_p3), [#allocation2], %s1542_s27 }
  0x39   : > { %1866 = dma.done.wait (%p1957_p6), %s163_s6, 512  }
  0x3a   : > { %1868 = vsyncadd (%p1957_p6), %s163_s6, 4294966784  ;;  %s1543_s4 = sshll.u32 %s2028_s23, 1  ;;  %s173_s30 = scalar_lea.sflag [#allocation6], %s2028_s23 }
  0x3b   : > { %s2042_s8 = scalar_lea.vmem [#allocation5], %s1543_s4 }
  0x3c   : > { %1870 = dma.done.wait (%p1957_p6), %s173_s30, 32  }
  0x3d   : > { %1872 = vsyncadd (%p1957_p6), %s173_s30, 4294967264  ;;  %v211_v0 = vlaneseq  ;;  %v1896_v3 = vmov -1e+30   ;;  %v2060_v5 = vld [vmem:[%s2042_s8] sm:$0x3]  ;;  %v2071_v12 = vld [vmem:[%s2032_s7 + $0x8] sm:$0xff] }
  0x3e   : > { %v601_v6 = vld [vmem:[%s2032_s7] ss:$8 sm:$0x3]  ;;  %v214_v7 = vperm.slane %v2060_v5, 0  ;;  %v215_v8 = vperm.slane %v2060_v5, 1  ;;  %vm602_vm1 = vcmp.eq.s32.totalorder %v2060_v5, 0 }
  0x3f   : > { %v2049_v1 = vshrl.u32 %v211_v0, 7  ;;  %v2066_v9 = vld [vmem:[%s2032_s7] sm:$0xff]  ;;  %v603_v10 = vmul.f32 0.2, %v601_v6  ;;  %v2074_v13 = vld [vmem:[%s2032_s7 + $0x10] sm:$0xff]  ;;  %v2077_v14 = vld [vmem:[%s2032_s7 + $0x18] sm:$0xff] }
  0x40   : > { %v1545_v46 = vld [vmem:[%s2032_s7 + $0x1] ss:$8 sm:$0x3]  ;;  %vm648_vm6 = vcmp.eq.s32.totalorder %v2060_v5, 1  ;;  %vm696_vm9 = vcmp.eq.s32.totalorder %v2060_v5, 2  ;;  %vm744_vm13 = vcmp.eq.s32.totalorder %v2060_v5, 3 }
  0x41   : > { %vm599_vm0 = vcmp.eq.s32.totalorder %v2049_v1, 0  ;;  %v2053_v2 = vadd.s32 8, %v2049_v1  ;;  %vm2080_vm2 = vcmp.eq.s32.totalorder %v2049_v1, %v214_v7  ;;  %vm2085_vm3 = vcmp.eq.s32.totalorder %v2049_v1, %v215_v8  ;;  %s1561_s20 = sshll.u32 %s1935_s13, 1  ;;  %s202_s19 = scalar_lea.vmem [#allocation7], %s1543_s4 }
  0x42   : > { %v2057_v4 = vsel %vm599_vm0, 0.0, %v1896_v3  ;;  %v220_v19 = vsel %vm2080_vm2, %v2066_v9, 0.0  ;;  %v221_v20 = vsel %vm2085_vm3, %v2071_v12, 0.0  ;;  %v604_v25 = vsel %vm602_vm1, -1e+30, %v603_v10  ;;  %s1435_s17 = scalar_lea.hbm %s2703_s2, %s1561_s20  ;;  %s1437_s29 = sshll.u32 %s202_s19, 4  ;;  %s1438_s29 = int_to_ptr.vmem [resolvable:$true] %s1437_s29 }
  0x43   : > { %v605_v11 = vrot.slane %v2057_v4, 7  ;;  %vm2090_vm4 = vcmp.eq.s32.totalorder %v2053_v2, %v214_v7  ;;  %vm2095_vm5 = vcmp.eq.s32.totalorder %v2053_v2, %v215_v8  ;;  %v608_v27 = vperm.slane %v604_v25, 0  ;;  %s1439_s3 = sshll.u32 %s1435_s17, 4  ;;  %s1425_s5 = scalar_lea.sflag [#allocation4], %s2028_s23  ;;  %s1440_s3 = int_to_ptr.hbm [resolvable:$true] %s1439_s3 }
  0x44   : > { %v222_v21 = vsel %vm2090_vm4, %v2074_v13, 0.0  ;;  %v223_v22 = vsel %vm2095_vm5, %v2077_v14, 0.0  ;;  %v609_v28 = vperm.slane %v604_v25, 1  ;;  %v649_v49 = vmul.f32 0.2, %v1545_v46  ;;  %s1835_s13 = sshra.s32 %s1440_s3, 4  ;;  %s1836_s13 = int_to_ptr.hbm [resolvable:$true] %s1835_s13 }
  0x45   : > { %v2111_v23 = vadd.f32 %v222_v21, %v220_v19  ;;  %v2113_v24 = vadd.f32 %v223_v22, %v221_v20  ;;  %v606_v26 = vsel %vm599_vm0, -1e+30, %v605_v11  ;;  %vm792_vm1 = vcmp.eq.s32.totalorder %v2060_v5, 4  ;;  %s1837_s24 = scalar_lea.hbm %s1836_s13, 2  ;;  %s1841_s28 = scalar_lea.hbm %s2703_s2, 4 }
  0x46   : > { %v612_v29 = vadd.f32 %v608_v27, %v606_v26  ;;  %v613_v30 = vadd.f32 %v609_v28, %v606_v26  ;;  %v650_v56 = vsel %vm648_vm6, -1e+30, %v649_v49  ;;  %p1838_p6 = scmp.ne.s32.totalorder %s1836_s13, %s1837_s24  ;;  %p1842_p3 = scmp.lt.s32.totalorder %s1836_s13, %s2703_s2 }
  0x47   : > { %v656_v62 = vperm.slane %v650_v56, 0  ;;  %v657_v8 = vperm.slane %v650_v56, 1  ;;  %p1843_p4 = scmp.lt.s32.totalorder %s1841_s28, %s1837_s24 }
  0x48   : > { %v616_v31 = vsub.f32 %v2057_v4, %v612_v29  ;;  %v617_v32 = vsub.f32 %v2057_v4, %v613_v30  ;;  %v614_v53 = vmax.f32 %v2057_v4, %v612_v29  ;;  %v615_v58 = vmax.f32 %v2057_v4, %v613_v30  ;;  %p1839_p13 = pnand %p1838_p6, %p1964_p11 }
  0x49   : > { %p1844_p0 = por %p1843_p4, %p1842_p3 }
  0x4a   : > { %v618_v33 = vand.u32 2147483647, %v616_v31  ;;  %v619_v34 = vand.u32 2147483647, %v617_v32  ;;  %p1840_p2 = pneg %p1839_p13 }
  0x4c   : > { %v620_v35 = vsub.f32 0.0, %v618_v33  ;;  %v621_v36 = vsub.f32 0.0, %v619_v34  ;;  %p1845_p5 = pnand %p1844_p0, %p1840_p2 }
  0x4e   : > { %v622_v37 = vmul.f32 1.442695, %v620_v35  ;;  %v624_v38 = vmul.f32 1.442695, %v621_v36 }
  0x50   : > { %1622 = vpow2.f32 %v622_v37  ;;  %v1546_v37 = vld [vmem:[%s2032_s7 + $0x2] ss:$8 sm:$0x3] }
  0x51   : > { %1624 = vpow2.f32 %v624_v38 }
  0x56   : > { %v1623_v39 = vpop.eup %1622 }
  0x57   : > { %v626_v40 = vadd.f32 1.0, %v1623_v39  ;;  %v629_v41 = vmul.f32 -0.5, %v1623_v39  ;;  %v1625_v42 = vpop.eup %1624  ;;  %v632_v47 = vand.u32 2147483647, %v1623_v39 }
  0x58   : > { %v635_v44 = vadd.f32 1.0, %v1625_v42  ;;  %v638_v45 = vmul.f32 -0.5, %v1625_v42  ;;  %v641_v51 = vand.u32 2147483647, %v1625_v42 }
  0x59   : > { %1626 = vlog2.f32 %v626_v40  ;;  %v630_v43 = vadd.f32 1.0, %v629_v41  ;;  %vm633_vm7 = vcmp.lt.f32.partialorder %v632_v47, 0.0004427343  ;;  %v697_v40 = vmul.f32 0.2, %v1546_v37 }
  0x5a   : > { %1628 = vlog2.f32 %v635_v44  ;;  %v639_v48 = vadd.f32 1.0, %v638_v45  ;;  %vm642_vm8 = vcmp.lt.f32.partialorder %v641_v51, 0.0004427343 }
  0x5b   : > { %v631_v50 = vmul.f32 %v1623_v39, %v630_v43  ;;  %v698_v47 = vsel %vm696_vm9, -1e+30, %v697_v40 }
  0x5c   : > { %v640_v55 = vmul.f32 %v1625_v42, %v639_v48 }
  0x5f   : > { %v1627_v52 = vpop.eup %1626 }
  0x60   : > { %v628_v54 = vmul.f32 0.6931472, %v1627_v52  ;;  %v1629_v57 = vpop.eup %1628 }
  0x61   : > { %v637_v60 = vmul.f32 0.6931472, %v1629_v57 }
  0x62   : > { %v634_v59 = vsel %vm633_vm7, %v631_v50, %v628_v54 }
  0x63   : > { %v644_v61 = vadd.f32 %v634_v59, %v614_v53  ;;  %v643_v63 = vsel %vm642_vm8, %v640_v55, %v637_v60  ;;  %v704_v53 = vperm.slane %v698_v47, 0  ;;  %v705_v59 = vperm.slane %v698_v47, 1 }
  0x64   : > { %v645_v6 = vadd.f32 %v643_v63, %v615_v58 }
  0x65   : > { %v651_v3 = vrot.slane %v644_v61, 7 }
  0x66   : > { %v652_v10 = vrot.slane %v645_v6, 7 }
  0x67   : > { %v653_v7 = vsel %vm599_vm0, -1e+30, %v651_v3 }
  0x68   : > { %v660_v11 = vadd.f32 %v656_v62, %v653_v7  ;;  %v654_v19 = vsel %vm599_vm0, -1e+30, %v652_v10 }
  0x69   : > { %v661_v21 = vadd.f32 %v657_v8, %v654_v19 }
  0x6a   : > { %v664_v20 = vsub.f32 %v644_v61, %v660_v11  ;;  %v662_v44 = vmax.f32 %v644_v61, %v660_v11 }
  0x6b   : > { %v665_v22 = vsub.f32 %v645_v6, %v661_v21  ;;  %v663_v49 = vmax.f32 %v645_v6, %v661_v21 }
  0x6c   : > { %v666_v4 = vand.u32 2147483647, %v664_v20 }
  0x6d   : > { %v667_v26 = vand.u32 2147483647, %v665_v22 }
  0x6e   : > { %v668_v25 = vsub.f32 0.0, %v666_v4 }
  0x6f   : > { %v669_v28 = vsub.f32 0.0, %v667_v26 }
  0x70   : > { %v670_v27 = vmul.f32 1.442695, %v668_v25 }
  0x71   : > { %v672_v29 = vmul.f32 1.442695, %v669_v28 }
  0x72   : > { %1630 = vpow2.f32 %v670_v27  ;;  %v1547_v27 = vld [vmem:[%s2032_s7 + $0x3] ss:$8 sm:$0x3] }
  0x73   : > { %1632 = vpow2.f32 %v672_v29 }
  0x78   : > { %v1631_v30 = vpop.eup %1630 }
  0x79   : > { %v674_v31 = vadd.f32 1.0, %v1631_v30  ;;  %v677_v32 = vmul.f32 -0.5, %v1631_v30  ;;  %v1633_v33 = vpop.eup %1632  ;;  %v680_v38 = vand.u32 2147483647, %v1631_v30 }
  0x7a   : > { %v683_v35 = vadd.f32 1.0, %v1633_v33  ;;  %v686_v36 = vmul.f32 -0.5, %v1633_v33  ;;  %v689_v42 = vand.u32 2147483647, %v1633_v33 }
  0x7b   : > { %1634 = vlog2.f32 %v674_v31  ;;  %v678_v34 = vadd.f32 1.0, %v677_v32  ;;  %vm681_vm10 = vcmp.lt.f32.partialorder %v680_v38, 0.0004427343  ;;  %v745_v31 = vmul.f32 0.2, %v1547_v27 }
  0x7c   : > { %1636 = vlog2.f32 %v683_v35  ;;  %v687_v39 = vadd.f32 1.0, %v686_v36  ;;  %vm690_vm11 = vcmp.lt.f32.partialorder %v689_v42, 0.0004427343 }
  0x7d   : > { %v679_v41 = vmul.f32 %v1631_v30, %v678_v34  ;;  %v746_v38 = vsel %vm744_vm13, -1e+30, %v745_v31 }
  0x7e   : > { %v688_v46 = vmul.f32 %v1633_v33, %v687_v39 }
  0x81   : > { %v1635_v43 = vpop.eup %1634 }
  0x82   : > { %v676_v45 = vmul.f32 0.6931472, %v1635_v43  ;;  %v1637_v48 = vpop.eup %1636 }
  0x83   : > { %v685_v51 = vmul.f32 0.6931472, %v1637_v48 }
  0x84   : > { %v682_v50 = vsel %vm681_vm10, %v679_v41, %v676_v45  ;;  %v752_v45 = vperm.slane %v746_v38, 0 }
  0x85   : > { %v692_v52 = vadd.f32 %v682_v50, %v662_v44  ;;  %v691_v54 = vsel %vm690_vm11, %v688_v46, %v685_v51  ;;  %v753_v50 = vperm.slane %v746_v38, 1 }
  0x86   : > { %v693_v56 = vadd.f32 %v691_v54, %v663_v49 }
  0x87   : > { %v699_v55 = vrot.slane %v692_v52, 7 }
  0x88   : > { %v700_v58 = vrot.slane %v693_v56, 7 }
  0x89   : > { %v701_v57 = vsel %vm599_vm0, -1e+30, %v699_v55 }
  0x8a   : > { %v708_v60 = vadd.f32 %v704_v53, %v701_v57  ;;  %v702_v61 = vsel %vm599_vm0, -1e+30, %v700_v58 }
  0x8b   : > { %v709_v63 = vadd.f32 %v705_v59, %v702_v61 }
  0x8c   : > { %v712_v62 = vsub.f32 %v692_v52, %v708_v60  ;;  %v710_v33 = vmax.f32 %v692_v52, %v708_v60 }
  0x8d   : > { %v713_v6 = vsub.f32 %v693_v56, %v709_v63  ;;  %v711_v42 = vmax.f32 %v693_v56, %v709_v63 }
  0x8e   : > { %v714_v3 = vand.u32 2147483647, %v712_v62 }
  0x8f   : > { %v715_v8 = vand.u32 2147483647, %v713_v6 }
  0x90   : > { %v716_v7 = vsub.f32 0.0, %v714_v3 }
  0x91   : > { %v717_v11 = vsub.f32 0.0, %v715_v8 }
  0x92   : > { %v718_v10 = vmul.f32 1.442695, %v716_v7 }
  0x93   : > { %v720_v19 = vmul.f32 1.442695, %v717_v11 }
  0x94   : > { %1638 = vpow2.f32 %v718_v10 }
  0x95   : > { %1640 = vpow2.f32 %v720_v19 }
  0x9a   : > { %v1639_v20 = vpop.eup %1638 }
  0x9b   : > { %v722_v21 = vadd.f32 1.0, %v1639_v20  ;;  %v725_v4 = vmul.f32 -0.5, %v1639_v20  ;;  %v1641_v22 = vpop.eup %1640  ;;  %v728_v26 = vand.u32 2147483647, %v1639_v20 }
  0x9c   : > { %v731_v28 = vadd.f32 1.0, %v1641_v22  ;;  %v734_v29 = vmul.f32 -0.5, %v1641_v22  ;;  %v737_v36 = vand.u32 2147483647, %v1641_v22 }
  0x9d   : > { %1642 = vlog2.f32 %v722_v21  ;;  %v726_v25 = vadd.f32 1.0, %v725_v4  ;;  %vm729_vm12 = vcmp.lt.f32.partialorder %v728_v26, 0.0004427343 }
  0x9e   : > { %1644 = vlog2.f32 %v731_v28  ;;  %v735_v34 = vadd.f32 1.0, %v734_v29  ;;  %vm738_vm14 = vcmp.lt.f32.partialorder %v737_v36, 0.0004427343 }
  0x9f   : > { %v727_v30 = vmul.f32 %v1639_v20, %v726_v25  ;;  %v1548_v20 = vld [vmem:[%s2032_s7 + $0x4] ss:$8 sm:$0x3] }
  0xa0   : > { %v736_v39 = vmul.f32 %v1641_v22, %v735_v34  ;;  %v793_v28 = vmul.f32 0.2, %v1548_v20 }
  0xa2   : > { %v794_v34 = vsel %vm792_vm1, -1e+30, %v793_v28 }
  0xa3   : > { %v1643_v32 = vpop.eup %1642  ;;  %v800_v38 = vperm.slane %v794_v34, 0 }
  0xa4   : > { %v724_v35 = vmul.f32 0.6931472, %v1643_v32  ;;  %v1645_v41 = vpop.eup %1644 }
  0xa5   : > { %v733_v43 = vmul.f32 0.6931472, %v1645_v41  ;;  %v2152_v41 = vsel %vm2080_vm2, -1e+30, %v2066_v9  ;;  %v2171_v9 = vsel %vm2095_vm5, -1e+30, %v2077_v14 }
  0xa6   : > { %v730_v37 = vsel %vm729_vm12, %v727_v30, %v724_v35  ;;  %vm840_vm2 = vcmp.eq.s32.totalorder %v2060_v5, 5 }
  0xa7   : > { %v740_v40 = vadd.f32 %v730_v37, %v710_v33  ;;  %v739_v46 = vsel %vm738_vm14, %v736_v39, %v733_v43  ;;  %v801_v39 = vperm.slane %v794_v34, 1 }
  0xa8   : > { %v741_v48 = vadd.f32 %v739_v46, %v711_v42  ;;  %v2157_v42 = vsel %vm2090_vm4, -1e+30, %v2074_v13  ;;  %v2166_v46 = vsel %vm2085_vm3, -1e+30, %v2071_v12 }
  0xa9   : > { %v747_v44 = vrot.slane %v740_v40, 7  ;;  %v242_v13 = vmax.f32 %v2152_v41, %v2157_v42 }
  0xaa   : > { %v748_v51 = vrot.slane %v741_v48, 7 }
  0xab   : > { %v749_v47 = vsel %vm599_vm0, -1e+30, %v747_v44  ;;  %v243_v12 = vrot.slane %v242_v13, 4 }
  0xac   : > { %v756_v49 = vadd.f32 %v752_v45, %v749_v47  ;;  %v750_v53 = vsel %vm599_vm0, -1e+30, %v748_v51 }
  0xad   : > { %v757_v54 = vadd.f32 %v753_v50, %v750_v53  ;;  %v244_v14 = vmax.f32 %v242_v13, %v243_v12 }
  0xae   : > { %v760_v52 = vsub.f32 %v740_v40, %v756_v49  ;;  %v758_v25 = vmax.f32 %v740_v40, %v756_v49 }
  0xaf   : > { %v761_v57 = vsub.f32 %v741_v48, %v757_v54  ;;  %v759_v31 = vmax.f32 %v741_v48, %v757_v54  ;;  %v249_v48 = vmax.f32 %v2166_v46, %v2171_v9 }
  0xb0   : > { %v762_v55 = vand.u32 2147483647, %v760_v52 }
  0xb1   : > { %v763_v58 = vand.u32 2147483647, %v761_v57  ;;  %v250_v51 = vrot.slane %v249_v48, 4 }
  0xb2   : > { %v764_v56 = vsub.f32 0.0, %v762_v55  ;;  %v245_v55 = vrot.slane %v244_v14, 2 }
  0xb3   : > { %v765_v60 = vsub.f32 0.0, %v763_v58  ;;  %v251_v54 = vmax.f32 %v249_v48, %v250_v51 }
  0xb4   : > { %v766_v59 = vmul.f32 1.442695, %v764_v56 }
  0xb5   : > { %v768_v61 = vmul.f32 1.442695, %v765_v60  ;;  %v252_v56 = vrot.slane %v251_v54, 2  ;;  %v246_v60 = vmax.f32 %v244_v14, %v245_v55 }
  0xb6   : > { %1646 = vpow2.f32 %v766_v59 }
  0xb7   : > { %1648 = vpow2.f32 %v768_v61 }
  0xbc   : > { %v1647_v62 = vpop.eup %1646 }
  0xbd   : > { %v770_v63 = vadd.f32 1.0, %v1647_v62  ;;  %v1649_v3 = vpop.eup %1648  ;;  %v773_v6 = vmul.f32 -0.5, %v1647_v62  ;;  %v776_v19 = vand.u32 2147483647, %v1647_v62 }
  0xbe   : > { %v779_v7 = vadd.f32 1.0, %v1649_v3  ;;  %v782_v10 = vmul.f32 -0.5, %v1649_v3  ;;  %v785_v26 = vand.u32 2147483647, %v1649_v3 }
  0xbf   : > { %1650 = vlog2.f32 %v770_v63  ;;  %v774_v8 = vadd.f32 1.0, %v773_v6  ;;  %vm777_vm15 = vcmp.lt.f32.partialorder %v776_v19, 0.0004427343 }
  0xc0   : > { %1652 = vlog2.f32 %v779_v7  ;;  %v783_v22 = vadd.f32 1.0, %v782_v10  ;;  %vm786_vm6 = vcmp.lt.f32.partialorder %v785_v26, 0.0004427343  ;;  %v1549_v7 = vld [vmem:[%s2032_s7 + $0x5] ss:$8 sm:$0x3] }
  0xc1   : > { %v775_v4 = vmul.f32 %v1647_v62, %v774_v8  ;;  %v247_v10 = vrot.slane %v246_v60, 1  ;;  %v841_v20 = vmul.f32 0.2, %v1549_v7 }
  0xc2   : > { %v784_v30 = vmul.f32 %v1649_v3, %v783_v22  ;;  %v253_v3 = vmax.f32 %v251_v54, %v252_v56 }
  0xc3   : > { %v2182_v26 = vmax.f32 %v246_v60, %v247_v10  ;;  %v1550_v10 = vld [vmem:[%s2032_s7 + $0x6] ss:$8 sm:$0x3] }
  0xc5   : > { %v1651_v11 = vpop.eup %1650  ;;  %vm256_vm5 = vcmp.eq.f32.partialorder %v2152_v41, %v2182_v26  ;;  %vm258_vm7 = vcmp.eq.f32.partialorder %v2157_v42, %v2182_v26 }
  0xc6   : > { %v772_v21 = vmul.f32 0.6931472, %v1651_v11  ;;  %v1653_v27 = vpop.eup %1652 }
  0xc7   : > { %v781_v32 = vmul.f32 0.6931472, %v1653_v27 }
  0xc8   : > { %v778_v29 = vsel %vm777_vm15, %v775_v4, %v772_v21  ;;  %v254_v21 = vrot.slane %v253_v3, 1  ;;  %vm888_vm15 = vcmp.eq.s32.totalorder %v2060_v5, 6 }
  0xc9   : > { %v2143_v33 = vadd.f32 %v778_v29, %v758_v25  ;;  %v787_v35 = vsel %vm786_vm6, %v784_v30, %v781_v32 }
  0xca   : > { %v2145_v36 = vadd.f32 %v787_v35, %v759_v31  ;;  %v842_v31 = vsel %vm840_vm2, -1e+30, %v841_v20  ;;  %v2185_v32 = vmax.f32 %v253_v3, %v254_v21 }
  0xcb   : > { %v795_v37 = vrot.slane %v2143_v33, 7 }
  0xcc   : > { %v796_v40 = vrot.slane %v2145_v36, 7  ;;  %vm257_vm8 = vcmp.eq.f32.partialorder %v2166_v46, %v2185_v32  ;;  %vm259_vm9 = vcmp.eq.f32.partialorder %v2171_v9, %v2185_v32 }
  0xcd   : > { %v797_v43 = vsel %vm599_vm0, -1e+30, %v795_v37  ;;  %v263_v48 = vsel %vm259_vm9, %v2053_v2, 16 }
  0xce   : > { %v798_v44 = vsel %vm599_vm0, -1e+30, %v796_v40  ;;  %v804_v45 = vadd.f32 %v800_v38, %v797_v43  ;;  %v848_v38 = vperm.slane %v842_v31, 0  ;;  %v849_v40 = vperm.slane %v842_v31, 1 }
  0xcf   : > { %v805_v15 = vadd.f32 %v801_v39, %v798_v44  ;;  %v260_v43 = vsel %vm256_vm5, %v2049_v1, 16  ;;  %v262_v44 = vsel %vm258_vm7, %v2053_v2, 16 }
  0xd0   : > { %v808_v17 = vsub.f32 %v2143_v33, %v804_v45  ;;  %v806_v25 = vmax.f32 %v2143_v33, %v804_v45  ;;  %vm264_vm10 = vcmp.lt.s32.totalorder %v260_v43, %v262_v44 }
  0xd1   : > { %v809_v47 = vsub.f32 %v2145_v36, %v805_v15  ;;  %v807_v30 = vmax.f32 %v2145_v36, %v805_v15  ;;  %v265_v51 = vsel %vm264_vm10, %v260_v43, %v262_v44  ;;  %vm936_vm10 = vcmp.eq.s32.totalorder %v2060_v5, 7 }
  0xd2   : > { %v810_v49 = vand.u32 2147483647, %v808_v17  ;;  %v261_v17 = vsel %vm257_vm8, %v2049_v1, 16  ;;  %v266_v14 = vrot.slane %v265_v51, 4 }
  0xd3   : > { %v811_v16 = vand.u32 2147483647, %v809_v47  ;;  %vm275_vm11 = vcmp.lt.s32.totalorder %v261_v17, %v263_v48 }
  0xd4   : > { %v812_v50 = vsub.f32 0.0, %v810_v49  ;;  %vm267_vm12 = vcmp.lt.s32.totalorder %v265_v51, %v266_v14 }
  0xd5   : > { %v813_v52 = vsub.f32 0.0, %v811_v16 }
  0xd6   : > { %v814_v18 = vmul.f32 1.442695, %v812_v50 }
  0xd7   : > { %v816_v53 = vmul.f32 1.442695, %v813_v52 }
  0xd8   : > { %1654 = vpow2.f32 %v814_v18 }
  0xd9   : > { %1656 = vpow2.f32 %v816_v53  ;;  %v276_v53 = vsel %vm275_vm11, %v261_v17, %v263_v48 }
  0xda   : > { %v277_v56 = vrot.slane %v276_v53, 4 }
  0xdc   : > { %vm278_vm13 = vcmp.lt.s32.totalorder %v276_v53, %v277_v56 }
  0xdd   : > { %v279_v3 = vsel %vm278_vm13, %v276_v53, %v277_v56 }
  0xde   : > { %v1655_v57 = vpop.eup %1654 }
  0xdf   : > { %v818_v58 = vadd.f32 1.0, %v1655_v57  ;;  %v1657_v59 = vpop.eup %1656  ;;  %v821_v61 = vmul.f32 -0.5, %v1655_v57  ;;  %v824_v8 = vand.u32 2147483647, %v1655_v57 }
  0xe0   : > { %v827_v62 = vadd.f32 1.0, %v1657_v59  ;;  %v830_v63 = vmul.f32 -0.5, %v1657_v59  ;;  %v833_v19 = vand.u32 2147483647, %v1657_v59 }
  0xe1   : > { %1658 = vlog2.f32 %v818_v58  ;;  %v822_v6 = vadd.f32 1.0, %v821_v61  ;;  %vm825_vm3 = vcmp.lt.f32.partialorder %v824_v8, 0.0004427343  ;;  %v268_v58 = vsel %vm267_vm12, %v265_v51, %v266_v14 }
  0xe2   : > { %1660 = vlog2.f32 %v827_v62  ;;  %v831_v11 = vadd.f32 1.0, %v830_v63  ;;  %vm834_vm4 = vcmp.lt.f32.partialorder %v833_v19, 0.0004427343  ;;  %v269_v63 = vrot.slane %v268_v58, 2 }
  0xe3   : > { %v823_v4 = vmul.f32 %v1655_v57, %v822_v6 }
  0xe4   : > { %v832_v28 = vmul.f32 %v1657_v59, %v831_v11  ;;  %v280_v11 = vrot.slane %v279_v3, 2  ;;  %vm270_vm14 = vcmp.lt.s32.totalorder %v268_v58, %v269_v63 }
  0xe6   : > { %vm281_vm1 = vcmp.lt.s32.totalorder %v279_v3, %v280_v11 }
  0xe7   : > { %v1659_v22 = vpop.eup %1658 }
  0xe8   : > { %v820_v27 = vmul.f32 0.6931472, %v1659_v22  ;;  %v1661_v29 = vpop.eup %1660 }
  0xe9   : > { %v829_v35 = vmul.f32 0.6931472, %v1661_v29 }
  0xea   : > { %v826_v34 = vsel %vm825_vm3, %v823_v4, %v820_v27  ;;  %v889_v4 = vmul.f32 0.2, %v1550_v10  ;;  %v271_v27 = vsel %vm270_vm14, %v268_v58, %v269_v63 }
  0xeb   : > { %v2187_v37 = vadd.f32 %v826_v34, %v806_v25  ;;  %v835_v33 = vsel %vm834_vm4, %v832_v28, %v829_v35 }
  0xec   : > { %v2193_v39 = vadd.f32 %v835_v33, %v807_v30  ;;  %v890_v35 = vsel %vm888_vm15, -1e+30, %v889_v4  ;;  %v272_v33 = vrot.slane %v271_v27, 1 }
  0xed   : > { %v843_v36 = vrot.slane %v2187_v37, 7 }
  0xee   : > { %v844_v45 = vrot.slane %v2193_v39, 7  ;;  %vm273_vm3 = vcmp.lt.s32.totalorder %v271_v27, %v272_v33 }
  0xef   : > { %v845_v15 = vsel %vm599_vm0, -1e+30, %v843_v36 }
  0xf0   : > { %v852_v13 = vadd.f32 %v848_v38, %v845_v15  ;;  %v846_v47 = vsel %vm599_vm0, -1e+30, %v844_v45  ;;  %v282_v38 = vsel %vm281_vm1, %v279_v3, %v280_v11  ;;  %v896_v45 = vperm.slane %v890_v35, 0  ;;  %v1551_v11 = vld [vmem:[%s2032_s7 + $0x7] ss:$8 sm:$0x3] }
  0xf1   : > { %v853_v49 = vadd.f32 %v849_v40, %v846_v47  ;;  %v283_v15 = vrot.slane %v282_v38, 1 }
  0xf2   : > { %v856_v16 = vsub.f32 %v2187_v37, %v852_v13  ;;  %v854_v28 = vmax.f32 %v2187_v37, %v852_v13  ;;  %v897_v13 = vperm.slane %v890_v35, 1 }
  0xf3   : > { %v857_v12 = vsub.f32 %v2193_v39, %v853_v49  ;;  %v855_v34 = vmax.f32 %v2193_v39, %v853_v49  ;;  %v274_v49 = vsel %vm273_vm3, %v271_v27, %v272_v33  ;;  %vm284_vm4 = vcmp.lt.s32.totalorder %v282_v38, %v283_v15 }
  0xf4   : > { %v858_v50 = vand.u32 2147483647, %v856_v16  ;;  %v285_v51 = vsel %vm284_vm4, %v282_v38, %v283_v15  ;;  %vm286_vm5 = vcmp.eq.s32.totalorder %v2049_v1, %v274_v49  ;;  %vm288_vm7 = vcmp.eq.s32.totalorder %v2053_v2, %v274_v49 }
  0xf5   : > { %v859_v52 = vand.u32 2147483647, %v857_v12  ;;  %vm287_vm8 = vcmp.eq.s32.totalorder %v2049_v1, %v285_v51  ;;  %vm289_vm9 = vcmp.eq.s32.totalorder %v2053_v2, %v285_v51 }
  0xf6   : > { %v860_v18 = vsub.f32 0.0, %v858_v50  ;;  %v2238_v58 = vsel %vm287_vm8, -1e+30, %v2166_v46 }
  0xf7   : > { %v861_v54 = vsub.f32 0.0, %v859_v52 }
  0xf8   : > { %v862_v55 = vmul.f32 1.442695, %v860_v18 }
  0xf9   : > { %v864_v57 = vmul.f32 1.442695, %v861_v54  ;;  %v2232_v54 = vsel %vm286_vm5, -1e+30, %v2152_v41  ;;  %vm984_vm5 = vcmp.eq.s32.totalorder %v2060_v5, 8 }
  0xfa   : > { %1662 = vpow2.f32 %v862_v55  ;;  %v2235_v55 = vsel %vm288_vm7, -1e+30, %v2157_v42 }
  0xfb   : > { %1664 = vpow2.f32 %v864_v57 }
 0x100   : > { %v1663_v59 = vpop.eup %1662 }
 0x101   : > { %v866_v60 = vadd.f32 1.0, %v1663_v59  ;;  %v869_v61 = vmul.f32 -0.5, %v1663_v59  ;;  %v1665_v62 = vpop.eup %1664  ;;  %v872_v19 = vand.u32 2147483647, %v1663_v59 }
 0x102   : > { %v875_v6 = vadd.f32 1.0, %v1665_v62  ;;  %v878_v8 = vmul.f32 -0.5, %v1665_v62  ;;  %v881_v21 = vand.u32 2147483647, %v1665_v62 }
 0x103   : > { %1666 = vlog2.f32 %v866_v60  ;;  %v870_v7 = vadd.f32 1.0, %v869_v61  ;;  %vm873_vm6 = vcmp.lt.f32.partialorder %v872_v19, 0.0004427343  ;;  %v296_v61 = vmax.f32 %v2232_v54, %v2235_v55 }
 0x104   : > { %1668 = vlog2.f32 %v875_v6  ;;  %v879_v20 = vadd.f32 1.0, %v878_v8  ;;  %vm882_vm2 = vcmp.lt.f32.partialorder %v881_v21, 0.0004427343 }
 0x105   : > { %v871_v22 = vmul.f32 %v1663_v59, %v870_v7  ;;  %v2241_v59 = vsel %vm289_vm9, -1e+30, %v2171_v9  ;;  %v297_v42 = vrot.slane %v296_v61, 4 }
 0x106   : > { %v880_v30 = vmul.f32 %v1665_v62, %v879_v20  ;;  %v303_v41 = vmax.f32 %v2238_v58, %v2241_v59 }
 0x107   : > { %v298_v7 = vmax.f32 %v296_v61, %v297_v42 }
 0x108   : > { %v304_v63 = vrot.slane %v303_v41, 4 }
 0x109   : > { %v1667_v25 = vpop.eup %1666  ;;  %v299_v4 = vrot.slane %v298_v7, 2 }
 0x10a   : > { %v868_v29 = vmul.f32 0.6931472, %v1667_v25  ;;  %v1669_v31 = vpop.eup %1668  ;;  %v305_v19 = vmax.f32 %v303_v41, %v304_v63  ;;  %v937_v25 = vmul.f32 0.2, %v1551_v11 }
 0x10b   : > { %v877_v40 = vmul.f32 0.6931472, %v1669_v31  ;;  %v300_v33 = vmax.f32 %v298_v7, %v299_v4 }
 0x10c   : > { %v874_v36 = vsel %vm873_vm6, %v871_v22, %v868_v29  ;;  %v306_v29 = vrot.slane %v305_v19, 2 }
 0x10d   : > { %v2215_v43 = vadd.f32 %v874_v36, %v854_v28  ;;  %v883_v44 = vsel %vm882_vm2, %v880_v30, %v877_v40  ;;  %v938_v36 = vsel %vm936_vm10, -1e+30, %v937_v25  ;;  %v1552_v25 = vld [vmem:[%s2032_s7 + $0x10] ss:$8 sm:$0x3] }
 0x10e   : > { %v2217_v17 = vadd.f32 %v883_v44, %v855_v34 }
 0x10f   : > { %v891_v37 = vrot.slane %v2215_v43, 7 }
 0x110   : > { %v892_v47 = vrot.slane %v2217_v17, 7 }
 0x111   : > { %v893_v39 = vsel %vm599_vm0, -1e+30, %v891_v37 }
 0x112   : > { %v900_v48 = vadd.f32 %v896_v45, %v893_v39  ;;  %v894_v16 = vsel %vm599_vm0, -1e+30, %v892_v47  ;;  %v307_v45 = vmax.f32 %v305_v19, %v306_v29  ;;  %v301_v47 = vrot.slane %v300_v33, 1 }
 0x113   : > { %v901_v12 = vadd.f32 %v897_v13, %v894_v16  ;;  %v944_v13 = vperm.slane %v938_v36, 0 }
 0x114   : > { %v904_v50 = vsub.f32 %v2215_v43, %v900_v48  ;;  %v902_v30 = vmax.f32 %v2215_v43, %v900_v48  ;;  %v945_v48 = vperm.slane %v938_v36, 1  ;;  %v308_v49 = vrot.slane %v307_v45, 1 }
 0x115   : > { %v905_v52 = vsub.f32 %v2217_v17, %v901_v12  ;;  %v903_v38 = vmax.f32 %v2217_v17, %v901_v12 }
 0x116   : > { %v906_v18 = vand.u32 2147483647, %v904_v50  ;;  %v2261_v50 = vmax.f32 %v300_v33, %v301_v47 }
 0x117   : > { %v907_v14 = vand.u32 2147483647, %v905_v52 }
 0x118   : > { %v908_v53 = vsub.f32 0.0, %v906_v18  ;;  %vm310_vm13 = vcmp.eq.f32.partialorder %v2232_v54, %v2261_v50  ;;  %vm312_vm14 = vcmp.eq.f32.partialorder %v2235_v55, %v2261_v50 }
 0x119   : > { %v909_v57 = vsub.f32 0.0, %v907_v14  ;;  %v2269_v14 = vmax.f32 %v307_v45, %v308_v49  ;;  %v314_v61 = vsel %vm310_vm13, %v2049_v1, 16  ;;  %v316_v41 = vsel %vm312_vm14, %v2053_v2, 16 }
 0x11a   : > { %v910_v56 = vmul.f32 1.442695, %v908_v53  ;;  %vm318_vm6 = vcmp.lt.s32.totalorder %v314_v61, %v316_v41 }
 0x11b   : > { %v912_v60 = vmul.f32 1.442695, %v909_v57  ;;  %vm311_vm15 = vcmp.eq.f32.partialorder %v2238_v58, %v2269_v14  ;;  %vm313_vm1 = vcmp.eq.f32.partialorder %v2241_v59, %v2269_v14 }
 0x11c   : > { %1670 = vpow2.f32 %v910_v56  ;;  %v315_v63 = vsel %vm311_vm15, %v2049_v1, 16 }
 0x11d   : > { %1672 = vpow2.f32 %v912_v60 }
 0x122   : > { %v1671_v62 = vpop.eup %1670 }
 0x123   : > { %v914_v3 = vadd.f32 1.0, %v1671_v62  ;;  %v917_v6 = vmul.f32 -0.5, %v1671_v62  ;;  %v1673_v46 = vpop.eup %1672  ;;  %v920_v20 = vand.u32 2147483647, %v1671_v62 }
 0x124   : > { %v923_v9 = vadd.f32 1.0, %v1673_v46  ;;  %v926_v10 = vmul.f32 -0.5, %v1673_v46  ;;  %v929_v22 = vand.u32 2147483647, %v1673_v46 }
 0x125   : > { %1674 = vlog2.f32 %v914_v3  ;;  %v918_v8 = vadd.f32 1.0, %v917_v6  ;;  %vm921_vm11 = vcmp.lt.f32.partialorder %v920_v20, 0.0004427343  ;;  %v317_v3 = vsel %vm313_vm1, %v2053_v2, 16 }
 0x126   : > { %1676 = vlog2.f32 %v923_v9  ;;  %v927_v21 = vadd.f32 1.0, %v926_v10  ;;  %vm930_vm12 = vcmp.lt.f32.partialorder %v929_v22, 0.0004427343  ;;  %vm329_vm2 = vcmp.lt.s32.totalorder %v315_v63, %v317_v3 }
 0x127   : > { %v919_v27 = vmul.f32 %v1671_v62, %v918_v8  ;;  %v330_v9 = vsel %vm329_vm2, %v315_v63, %v317_v3 }
 0x128   : > { %v928_v34 = vmul.f32 %v1673_v46, %v927_v21  ;;  %v319_v46 = vsel %vm318_vm6, %v314_v61, %v316_v41  ;;  %v331_v20 = vrot.slane %v330_v9, 4 }
 0x129   : > { %v320_v8 = vrot.slane %v319_v46, 4 }
 0x12a   : > { %vm332_vm4 = vcmp.lt.s32.totalorder %v330_v9, %v331_v20 }
 0x12b   : > { %v1675_v28 = vpop.eup %1674  ;;  %vm321_vm3 = vcmp.lt.s32.totalorder %v319_v46, %v320_v8 }
 0x12c   : > { %v916_v31 = vmul.f32 0.6931472, %v1675_v28  ;;  %v1677_v35 = vpop.eup %1676 }
 0x12d   : > { %v925_v44 = vmul.f32 0.6931472, %v1677_v35 }
 0x12e   : > { %v922_v40 = vsel %vm921_vm11, %v919_v27, %v916_v31  ;;  %v322_v31 = vsel %vm321_vm3, %v319_v46, %v320_v8 }
 0x12f   : > { %v2251_v15 = vadd.f32 %v922_v40, %v902_v30  ;;  %v931_v37 = vsel %vm930_vm12, %v928_v34, %v925_v44  ;;  %v985_v30 = vmul.f32 0.2, %v1552_v25  ;;  %v323_v45 = vrot.slane %v322_v31, 2 }
 0x130   : > { %v2253_v39 = vadd.f32 %v931_v37, %v903_v38  ;;  %v333_v38 = vsel %vm332_vm4, %v330_v9, %v331_v20 }
 0x131   : > { %v939_v43 = vrot.slane %v2251_v15, 7  ;;  %vm324_vm9 = vcmp.lt.s32.totalorder %v322_v31, %v323_v45 }
 0x132   : > { %v940_v16 = vrot.slane %v2253_v39, 7 }
 0x133   : > { %v941_v17 = vsel %vm599_vm0, -1e+30, %v939_v43 }
 0x134   : > { %v2259_v12 = vadd.f32 %v944_v13, %v941_v17  ;;  %v942_v51 = vsel %vm599_vm0, -1e+30, %v940_v16  ;;  %v986_v13 = vsel %vm984_vm5, -1e+30, %v985_v30 }
 0x135   : > { %v2265_v52 = vadd.f32 %v945_v48, %v942_v51  ;;  %v334_v48 = vrot.slane %v333_v38, 2  ;;  %v992_v16 = vperm.slane %v986_v13, 0  ;;  %v1553_v30 = vld [vmem:[%s2032_s7 + $0x11] ss:$8 sm:$0x3] }
 0x136   : > { %v952_v18 = vsub.f32 %v2251_v15, %v2259_v12  ;;  %v950_v33 = vmax.f32 %v2251_v15, %v2259_v12  ;;  %v993_v12 = vperm.slane %v986_v13, 1 }
 0x137   : > { %v953_v53 = vsub.f32 %v2253_v39, %v2265_v52  ;;  %v951_v37 = vmax.f32 %v2253_v39, %v2265_v52  ;;  %vm335_vm10 = vcmp.lt.s32.totalorder %v333_v38, %v334_v48  ;;  %v325_v52 = vsel %vm324_vm9, %v322_v31, %v323_v45 }
 0x138   : > { %v954_v57 = vand.u32 2147483647, %v952_v18  ;;  %v326_v61 = vrot.slane %v325_v52, 1 }
 0x139   : > { %v955_v56 = vand.u32 2147483647, %v953_v53 }
 0x13a   : > { %v956_v60 = vsub.f32 0.0, %v954_v57  ;;  %v336_v57 = vsel %vm335_vm10, %v333_v38, %v334_v48  ;;  %vm327_vm11 = vcmp.lt.s32.totalorder %v325_v52, %v326_v61 }
 0x13b   : > { %v957_v42 = vsub.f32 0.0, %v955_v56 }
 0x13c   : > { %v958_v62 = vmul.f32 1.442695, %v956_v60 }
 0x13d   : > { %v960_v6 = vmul.f32 1.442695, %v957_v42 }
 0x13e   : > { %1678 = vpow2.f32 %v958_v62  ;;  %v337_v62 = vrot.slane %v336_v57, 1 }
 0x13f   : > { %1680 = vpow2.f32 %v960_v6 }
 0x140   : > { %vm338_vm12 = vcmp.lt.s32.totalorder %v336_v57, %v337_v62 }
 0x141   : > { %v339_v8 = vsel %vm338_vm12, %v336_v57, %v337_v62 }
 0x142   : > { %vm341_vm15 = vcmp.eq.s32.totalorder %v2049_v1, %v339_v8  ;;  %vm343_vm1 = vcmp.eq.s32.totalorder %v2053_v2, %v339_v8 }
 0x143   : > { %v2323_v25 = vsel %vm343_vm1, -1e+30, %v2241_v59  ;;  %v2331_v59 = vld [vmem:[%s2042_s8] sm:$0x3] }
 0x144   : > { %v1679_v7 = vpop.eup %1678  ;;  %vm1032_vm6 = vcmp.eq.s32.totalorder %v2331_v59, 9 }
 0x145   : > { %v962_v10 = vadd.f32 1.0, %v1679_v7  ;;  %v965_v11 = vmul.f32 -0.5, %v1679_v7  ;;  %v1681_v19 = vpop.eup %1680  ;;  %v968_v27 = vand.u32 2147483647, %v1679_v7 }
 0x146   : > { %v971_v21 = vadd.f32 1.0, %v1681_v19  ;;  %v974_v22 = vmul.f32 -0.5, %v1681_v19  ;;  %v977_v29 = vand.u32 2147483647, %v1681_v19 }
 0x147   : > { %1682 = vlog2.f32 %v962_v10  ;;  %v966_v4 = vadd.f32 1.0, %v965_v11  ;;  %vm969_vm7 = vcmp.lt.f32.partialorder %v968_v27, 0.0004427343 }
 0x148   : > { %1684 = vlog2.f32 %v971_v21  ;;  %v975_v28 = vadd.f32 1.0, %v974_v22  ;;  %vm978_vm8 = vcmp.lt.f32.partialorder %v977_v29, 0.0004427343  ;;  %v2320_v22 = vsel %vm341_vm15, -1e+30, %v2238_v58 }
 0x149   : > { %v967_v34 = vmul.f32 %v1679_v7, %v966_v4  ;;  %v328_v7 = vsel %vm327_vm11, %v325_v52, %v326_v61  ;;  %vm1080_vm11 = vcmp.eq.s32.totalorder %v2331_v59, 10 }
 0x14a   : > { %v976_v40 = vmul.f32 %v1681_v19, %v975_v28  ;;  %vm340_vm13 = vcmp.eq.s32.totalorder %v2049_v1, %v328_v7  ;;  %vm342_vm14 = vcmp.eq.s32.totalorder %v2053_v2, %v328_v7 }
 0x14b   : > { %v2314_v11 = vsel %vm340_vm13, -1e+30, %v2232_v54  ;;  %v2317_v19 = vsel %vm342_vm14, -1e+30, %v2235_v55  ;;  %v357_v55 = vmax.f32 %v2320_v22, %v2323_v25 }
 0x14c   : > { %v350_v27 = vmax.f32 %v2314_v11, %v2317_v19 }
 0x14d   : > { %v1683_v35 = vpop.eup %1682 }
 0x14e   : > { %v964_v36 = vmul.f32 0.6931472, %v1683_v35  ;;  %v1685_v44 = vpop.eup %1684  ;;  %v351_v58 = vrot.slane %v350_v27, 4 }
 0x14f   : > { %v973_v43 = vmul.f32 0.6931472, %v1685_v44 }
 0x150   : > { %v970_v47 = vsel %vm969_vm7, %v967_v34, %v964_v36 }
 0x151   : > { %v2291_v49 = vadd.f32 %v970_v47, %v950_v33  ;;  %v979_v5 = vsel %vm978_vm8, %v976_v40, %v973_v43  ;;  %v1033_v33 = vmul.f32 0.2, %v1553_v30  ;;  %v358_v40 = vrot.slane %v357_v55, 4 }
 0x152   : > { %v2293_v15 = vadd.f32 %v979_v5, %v951_v37  ;;  %v352_v47 = vmax.f32 %v350_v27, %v351_v58 }
 0x153   : > { %v987_v17 = vrot.slane %v2291_v49, 7  ;;  %v1034_v48 = vsel %vm1032_vm6, -1e+30, %v1033_v33 }
 0x154   : > { %v988_v51 = vrot.slane %v2293_v15, 7  ;;  %v353_v52 = vrot.slane %v352_v47, 2 }
 0x155   : > { %v989_v39 = vsel %vm599_vm0, -1e+30, %v987_v17  ;;  %v359_v17 = vmax.f32 %v357_v55, %v358_v40 }
 0x156   : > { %v2299_v18 = vadd.f32 %v992_v16, %v989_v39  ;;  %v990_v53 = vsel %vm599_vm0, -1e+30, %v988_v51  ;;  %v1040_v39 = vperm.slane %v1034_v48, 0  ;;  %v354_v61 = vmax.f32 %v352_v47, %v353_v52 }
 0x157   : > { %v2303_v56 = vadd.f32 %v993_v12, %v990_v53  ;;  %v360_v57 = vrot.slane %v359_v17, 2 }
 0x158   : > { %v1000_v60 = vsub.f32 %v2291_v49, %v2299_v18  ;;  %v998_v44 = vmax.f32 %v2291_v49, %v2299_v18  ;;  %v1041_v18 = vperm.slane %v1034_v48, 1 }
 0x159   : > { %v1001_v41 = vsub.f32 %v2293_v15, %v2303_v56  ;;  %v999_v43 = vmax.f32 %v2293_v15, %v2303_v56 }
 0x15a   : > { %v1002_v42 = vand.u32 2147483647, %v1000_v60 }
 0x15b   : > { %v1003_v63 = vand.u32 2147483647, %v1001_v41 }
 0x15c   : > { %v1004_v3 = vsub.f32 0.0, %v1002_v42 }
 0x15d   : > { %v1005_v6 = vsub.f32 0.0, %v1003_v63  ;;  %v361_v63 = vmax.f32 %v359_v17, %v360_v57 }
 0x15e   : > { %v1006_v46 = vmul.f32 1.442695, %v1004_v3 }
 0x15f   : > { %v1008_v9 = vmul.f32 1.442695, %v1005_v6  ;;  %v362_v8 = vrot.slane %v361_v63, 1 }
 0x160   : > { %1686 = vpow2.f32 %v1006_v46  ;;  %v355_v46 = vrot.slane %v354_v61, 1 }
 0x161   : > { %1688 = vpow2.f32 %v1008_v9  ;;  %v2355_v27 = vmax.f32 %v361_v63, %v362_v8 }
 0x163   : > { %vm365_vm7 = vcmp.eq.f32.partialorder %v2320_v22, %v2355_v27  ;;  %vm367_vm8 = vcmp.eq.f32.partialorder %v2323_v25, %v2355_v27 }
 0x164   : > { %v371_v58 = vsel %vm367_vm8, %v2053_v2, 16 }
 0x166   : > { %v1687_v10 = vpop.eup %1686 }
 0x167   : > { %v1010_v20 = vadd.f32 1.0, %v1687_v10  ;;  %v1013_v21 = vmul.f32 -0.5, %v1687_v10  ;;  %v1689_v4 = vpop.eup %1688  ;;  %v1016_v31 = vand.u32 2147483647, %v1687_v10 }
 0x168   : > { %v1019_v28 = vadd.f32 1.0, %v1689_v4  ;;  %v1022_v29 = vmul.f32 -0.5, %v1689_v4  ;;  %v1025_v35 = vand.u32 2147483647, %v1689_v4 }
 0x169   : > { %1690 = vlog2.f32 %v1010_v20  ;;  %v1014_v54 = vadd.f32 1.0, %v1013_v21  ;;  %vm1017_vm2 = vcmp.lt.f32.partialorder %v1016_v31, 0.0004427343  ;;  %v2353_v21 = vmax.f32 %v354_v61, %v355_v46 }
 0x16a   : > { %1692 = vlog2.f32 %v1019_v28  ;;  %v1023_v34 = vadd.f32 1.0, %v1022_v29  ;;  %vm1026_vm3 = vcmp.lt.f32.partialorder %v1025_v35, 0.0004427343 }
 0x16b   : > { %v1015_v38 = vmul.f32 %v1687_v10, %v1014_v54  ;;  %vm364_vm4 = vcmp.eq.f32.partialorder %v2314_v11, %v2353_v21  ;;  %vm366_vm5 = vcmp.eq.f32.partialorder %v2317_v19, %v2353_v21 }
 0x16c   : > { %v1024_v37 = vmul.f32 %v1689_v4, %v1023_v34  ;;  %v368_v54 = vsel %vm364_vm4, %v2049_v1, 16  ;;  %v370_v29 = vsel %vm366_vm5, %v2053_v2, 16  ;;  %v369_v34 = vsel %vm365_vm7, %v2049_v1, 16 }
 0x16d   : > { %vm372_vm9 = vcmp.lt.s32.totalorder %v368_v54, %v370_v29  ;;  %vm383_vm10 = vcmp.lt.s32.totalorder %v369_v34, %v371_v58 }
 0x16e   : > { %v384_v47 = vsel %vm383_vm10, %v369_v34, %v371_v58 }
 0x16f   : > { %v1691_v36 = vpop.eup %1690  ;;  %v385_v52 = vrot.slane %v384_v47, 4 }
 0x170   : > { %v1012_v45 = vmul.f32 0.6931472, %v1691_v36  ;;  %v1693_v13 = vpop.eup %1692  ;;  %v1554_v36 = vld [vmem:[%s2032_s7 + $0x12] ss:$8 sm:$0x3] }
 0x171   : > { %v1021_v16 = vmul.f32 0.6931472, %v1693_v13  ;;  %v1081_v13 = vmul.f32 0.2, %v1554_v36  ;;  %vm386_vm15 = vcmp.lt.s32.totalorder %v384_v47, %v385_v52 }
 0x172   : > { %v1018_v5 = vsel %vm1017_vm2, %v1015_v38, %v1012_v45 }
 0x173   : > { %v2338_v12 = vadd.f32 %v1018_v5, %v998_v44  ;;  %v1027_v51 = vsel %vm1026_vm3, %v1024_v37, %v1021_v16  ;;  %v373_v44 = vsel %vm372_vm9, %v368_v54, %v370_v29  ;;  %vm1128_vm9 = vcmp.eq.s32.totalorder %v2331_v59, 11 }
 0x174   : > { %v2340_v53 = vadd.f32 %v1027_v51, %v999_v43  ;;  %v374_v5 = vrot.slane %v373_v44, 4 }
 0x175   : > { %v1035_v49 = vrot.slane %v2338_v12, 7 }
 0x176   : > { %v1036_v60 = vrot.slane %v2340_v53, 7  ;;  %vm375_vm14 = vcmp.lt.s32.totalorder %v373_v44, %v374_v5 }
 0x177   : > { %v1037_v15 = vsel %vm599_vm0, -1e+30, %v1035_v49 }
 0x178   : > { %v1044_v56 = vadd.f32 %v1040_v39, %v1037_v15  ;;  %v1038_v41 = vsel %vm599_vm0, -1e+30, %v1036_v60 }
 0x179   : > { %v2348_v42 = vadd.f32 %v1041_v18, %v1038_v41  ;;  %v1082_v18 = vsel %vm1080_vm11, -1e+30, %v1081_v13 }
 0x17a   : > { %v1048_v62 = vsub.f32 %v2338_v12, %v1044_v56  ;;  %v1046_v16 = vmax.f32 %v2338_v12, %v1044_v56  ;;  %v1088_v41 = vperm.slane %v1082_v18, 0  ;;  %v376_v56 = vsel %vm375_vm14, %v373_v44, %v374_v5 }
 0x17b   : > { %v1049_v3 = vsub.f32 %v2340_v53, %v2348_v42  ;;  %v1047_v49 = vmax.f32 %v2340_v53, %v2348_v42  ;;  %v1089_v63 = vperm.slane %v1082_v18, 1  ;;  %v387_v42 = vsel %vm386_vm15, %v384_v47, %v385_v52 }
 0x17c   : > { %v1050_v6 = vand.u32 2147483647, %v1048_v62  ;;  %v377_v46 = vrot.slane %v376_v56, 2 }
 0x17d   : > { %v1051_v7 = vand.u32 2147483647, %v1049_v3 }
 0x17e   : > { %v1052_v9 = vsub.f32 0.0, %v1050_v6  ;;  %vm378_vm1 = vcmp.lt.s32.totalorder %v376_v56, %v377_v46 }
 0x17f   : > { %v1053_v10 = vsub.f32 0.0, %v1051_v7  ;;  %v379_v29 = vsel %vm378_vm1, %v376_v56, %v377_v46  ;;  %vm1176_vm1 = vcmp.eq.s32.totalorder %v2331_v59, 12 }
 0x180   : > { %v1054_v20 = vmul.f32 1.442695, %v1052_v9  ;;  %v380_v58 = vrot.slane %v379_v29, 1 }
 0x181   : > { %v1056_v4 = vmul.f32 1.442695, %v1053_v10  ;;  %v388_v10 = vrot.slane %v387_v42, 2 }
 0x182   : > { %1694 = vpow2.f32 %v1054_v20  ;;  %vm381_vm2 = vcmp.lt.s32.totalorder %v379_v29, %v380_v58 }
 0x183   : > { %1696 = vpow2.f32 %v1056_v4  ;;  %vm389_vm6 = vcmp.lt.s32.totalorder %v387_v42, %v388_v10  ;;  %v382_v44 = vsel %vm381_vm2, %v379_v29, %v380_v58 }
 0x184   : > { %vm394_vm4 = vcmp.eq.s32.totalorder %v2049_v1, %v382_v44  ;;  %vm396_vm5 = vcmp.eq.s32.totalorder %v2053_v2, %v382_v44 }
 0x188   : > { %v1695_v28 = vpop.eup %1694 }
 0x189   : > { %v1058_v30 = vadd.f32 1.0, %v1695_v28  ;;  %v1061_v55 = vmul.f32 -0.5, %v1695_v28  ;;  %v1697_v31 = vpop.eup %1696  ;;  %v1064_v40 = vand.u32 2147483647, %v1695_v28 }
 0x18a   : > { %v1067_v35 = vadd.f32 1.0, %v1697_v31  ;;  %v1070_v38 = vmul.f32 -0.5, %v1697_v31  ;;  %v1073_v37 = vand.u32 2147483647, %v1697_v31 }
 0x18b   : > { %1698 = vlog2.f32 %v1058_v30  ;;  %v1062_v33 = vadd.f32 1.0, %v1061_v55  ;;  %vm1065_vm12 = vcmp.lt.f32.partialorder %v1064_v40, 0.0004427343 }
 0x18c   : > { %1700 = vlog2.f32 %v1067_v35  ;;  %v1071_v45 = vadd.f32 1.0, %v1070_v38  ;;  %vm1074_vm13 = vcmp.lt.f32.partialorder %v1073_v37, 0.0004427343 }
 0x18d   : > { %v1063_v43 = vmul.f32 %v1695_v28, %v1062_v33 }
 0x18e   : > { %v1072_v51 = vmul.f32 %v1697_v31, %v1071_v45  ;;  %v390_v31 = vsel %vm389_vm6, %v387_v42, %v388_v10 }
 0x18f   : > { %v391_v35 = vrot.slane %v390_v31, 1 }
 0x191   : > { %v1699_v48 = vpop.eup %1698  ;;  %vm392_vm3 = vcmp.lt.s32.totalorder %v390_v31, %v391_v35 }
 0x192   : > { %v1060_v17 = vmul.f32 0.6931472, %v1699_v48  ;;  %v1701_v39 = vpop.eup %1700  ;;  %v393_v37 = vsel %vm392_vm3, %v390_v31, %v391_v35 }
 0x193   : > { %v1069_v60 = vmul.f32 0.6931472, %v1701_v39  ;;  %vm395_vm7 = vcmp.eq.s32.totalorder %v2049_v1, %v393_v37  ;;  %vm397_vm8 = vcmp.eq.s32.totalorder %v2053_v2, %v393_v37  ;;  %v2401_v39 = vsel %vm396_vm5, -1e+30, %v2317_v19 }
 0x194   : > { %v1066_v57 = vsel %vm1065_vm12, %v1063_v43, %v1060_v17  ;;  %v1555_v43 = vld [vmem:[%s2032_s7 + $0x13] ss:$8 sm:$0x3] }
 0x195   : > { %v2374_v15 = vadd.f32 %v1066_v57, %v1046_v16  ;;  %v1075_v61 = vsel %vm1074_vm13, %v1072_v51, %v1069_v60  ;;  %v1129_v17 = vmul.f32 0.2, %v1555_v43  ;;  %v2398_v51 = vsel %vm394_vm4, -1e+30, %v2314_v11 }
 0x196   : > { %v2376_v62 = vadd.f32 %v1075_v61, %v1047_v49  ;;  %v2407_v57 = vsel %vm395_vm7, -1e+30, %v2320_v22  ;;  %v2410_v60 = vsel %vm397_vm8, -1e+30, %v2323_v25  ;;  %v404_v19 = vmax.f32 %v2398_v51, %v2401_v39 }
 0x197   : > { %v1083_v12 = vrot.slane %v2374_v15, 7  ;;  %v1130_v56 = vsel %vm1128_vm9, -1e+30, %v1129_v17  ;;  %v411_v22 = vmax.f32 %v2407_v57, %v2410_v60 }
 0x198   : > { %v1084_v3 = vrot.slane %v2376_v62, 7  ;;  %v405_v42 = vrot.slane %v404_v19, 4 }
 0x199   : > { %v1085_v53 = vsel %vm599_vm0, -1e+30, %v1083_v12 }
 0x19a   : > { %v2382_v6 = vadd.f32 %v1088_v41, %v1085_v53  ;;  %v1086_v7 = vsel %vm599_vm0, -1e+30, %v1084_v3  ;;  %v1136_v53 = vperm.slane %v1130_v56, 0 }
 0x19b   : > { %v2386_v9 = vadd.f32 %v1089_v63, %v1086_v7  ;;  %v1137_v7 = vperm.slane %v1130_v56, 1 }
 0x19c   : > { %v1096_v8 = vsub.f32 %v2374_v15, %v2382_v6  ;;  %v1094_v18 = vmax.f32 %v2374_v15, %v2382_v6 }
 0x19d   : > { %v1097_v20 = vsub.f32 %v2376_v62, %v2386_v9  ;;  %v1095_v12 = vmax.f32 %v2376_v62, %v2386_v9 }
 0x19e   : > { %v1098_v4 = vand.u32 2147483647, %v1096_v8  ;;  %v412_v8 = vrot.slane %v411_v22, 4 }
 0x19f   : > { %v1099_v28 = vand.u32 2147483647, %v1097_v20  ;;  %v406_v20 = vmax.f32 %v404_v19, %v405_v42 }
 0x1a0   : > { %v1100_v54 = vsub.f32 0.0, %v1098_v4  ;;  %v413_v29 = vmax.f32 %v411_v22, %v412_v8 }
 0x1a1   : > { %v1101_v30 = vsub.f32 0.0, %v1099_v28  ;;  %v407_v31 = vrot.slane %v406_v20, 2 }
 0x1a2   : > { %v1102_v55 = vmul.f32 1.442695, %v1100_v54  ;;  %v414_v35 = vrot.slane %v413_v29, 2 }
 0x1a3   : > { %v1104_v34 = vmul.f32 1.442695, %v1101_v30 }
 0x1a4   : > { %1702 = vpow2.f32 %v1102_v55  ;;  %v415_v44 = vmax.f32 %v413_v29, %v414_v35 }
 0x1a5   : > { %1704 = vpow2.f32 %v1104_v34 }
 0x1a6   : > { %v416_v37 = vrot.slane %v415_v44, 1 }
 0x1aa   : > { %v1703_v33 = vpop.eup %1702 }
 0x1ab   : > { %v1106_v38 = vadd.f32 1.0, %v1703_v33  ;;  %v1109_v36 = vmul.f32 -0.5, %v1703_v33  ;;  %v1705_v40 = vpop.eup %1704  ;;  %v1112_v48 = vand.u32 2147483647, %v1703_v33 }
 0x1ac   : > { %v1115_v45 = vadd.f32 1.0, %v1705_v40  ;;  %v1118_v47 = vmul.f32 -0.5, %v1705_v40  ;;  %v1121_v16 = vand.u32 2147483647, %v1705_v40 }
 0x1ad   : > { %1706 = vlog2.f32 %v1106_v38  ;;  %v1110_v13 = vadd.f32 1.0, %v1109_v36  ;;  %vm1113_vm10 = vcmp.lt.f32.partialorder %v1112_v48, 0.0004427343  ;;  %v408_v36 = vmax.f32 %v406_v20, %v407_v31 }
 0x1ae   : > { %1708 = vlog2.f32 %v1115_v45  ;;  %v1119_v5 = vadd.f32 1.0, %v1118_v47  ;;  %vm1122_vm11 = vcmp.lt.f32.partialorder %v1121_v16, 0.0004427343  ;;  %v2432_v16 = vmax.f32 %v415_v44, %v416_v37 }
 0x1af   : > { %v1111_v52 = vmul.f32 %v1703_v33, %v1110_v13  ;;  %v409_v45 = vrot.slane %v408_v36, 1 }
 0x1b0   : > { %v1120_v11 = vmul.f32 %v1705_v40, %v1119_v5  ;;  %vm419_vm14 = vcmp.eq.f32.partialorder %v2407_v57, %v2432_v16  ;;  %vm421_vm15 = vcmp.eq.f32.partialorder %v2410_v60, %v2432_v16 }
 0x1b1   : > { %v2430_v47 = vmax.f32 %v408_v36, %v409_v45 }
 0x1b3   : > { %v1707_v49 = vpop.eup %1706  ;;  %vm418_vm12 = vcmp.eq.f32.partialorder %v2398_v51, %v2430_v47  ;;  %vm420_vm13 = vcmp.eq.f32.partialorder %v2401_v39, %v2430_v47 }
 0x1b4   : > { %v1108_v61 = vmul.f32 0.6931472, %v1707_v49  ;;  %v1709_v41 = vpop.eup %1708  ;;  %v424_v56 = vsel %vm420_vm13, %v2053_v2, 16 }
 0x1b5   : > { %v1117_v15 = vmul.f32 0.6931472, %v1709_v41 }
 0x1b6   : > { %v1114_v63 = vsel %vm1113_vm10, %v1111_v52, %v1108_v61 }
 0x1b7   : > { %v2418_v3 = vadd.f32 %v1114_v63, %v1094_v18  ;;  %v1123_v25 = vsel %vm1122_vm11, %v1120_v11, %v1117_v15  ;;  %v1556_v18 = vld [vmem:[%s2032_s7 + $0x14] ss:$8 sm:$0x3]  ;;  %vm1224_vm11 = vcmp.eq.s32.totalorder %v2331_v59, 13 }
 0x1b8   : > { %v2420_v6 = vadd.f32 %v1123_v25, %v1095_v12  ;;  %v1177_v19 = vmul.f32 0.2, %v1556_v18  ;;  %v422_v12 = vsel %vm418_vm12, %v2049_v1, 16  ;;  %v423_v25 = vsel %vm419_vm14, %v2049_v1, 16 }
 0x1b9   : > { %v1131_v46 = vrot.slane %v2418_v3, 7  ;;  %vm426_vm2 = vcmp.lt.s32.totalorder %v422_v12, %v424_v56 }
 0x1ba   : > { %v1132_v62 = vrot.slane %v2420_v6, 7 }
 0x1bb   : > { %v1133_v9 = vsel %vm599_vm0, -1e+30, %v1131_v46 }
 0x1bc   : > { %v1140_v10 = vadd.f32 %v1136_v53, %v1133_v9  ;;  %v1134_v4 = vsel %vm599_vm0, -1e+30, %v1132_v62  ;;  %v425_v53 = vsel %vm421_vm15, %v2053_v2, 16  ;;  %v1178_v62 = vsel %vm1176_vm1, -1e+30, %v1177_v19 }
 0x1bd   : > { %v1141_v28 = vadd.f32 %v1137_v7, %v1134_v4  ;;  %vm437_vm4 = vcmp.lt.s32.totalorder %v423_v25, %v425_v53 }
 0x1be   : > { %v1144_v54 = vsub.f32 %v2418_v3, %v1140_v10  ;;  %v1142_v22 = vmax.f32 %v2418_v3, %v1140_v10  ;;  %v1184_v10 = vperm.slane %v1178_v62, 0 }
 0x1bf   : > { %v1145_v30 = vsub.f32 %v2420_v6, %v1141_v28  ;;  %v1143_v8 = vmax.f32 %v2420_v6, %v1141_v28 }
 0x1c0   : > { %v1146_v55 = vand.u32 2147483647, %v1144_v54  ;;  %v427_v54 = vsel %vm426_vm2, %v422_v12, %v424_v56 }
 0x1c1   : > { %v1147_v34 = vand.u32 2147483647, %v1145_v30  ;;  %v428_v31 = vrot.slane %v427_v54, 4 }
 0x1c2   : > { %v1148_v58 = vsub.f32 0.0, %v1146_v55  ;;  %v1185_v55 = vperm.slane %v1178_v62, 1 }
 0x1c3   : > { %v1149_v33 = vsub.f32 0.0, %v1147_v34  ;;  %v438_v34 = vsel %vm437_vm4, %v423_v25, %v425_v53  ;;  %vm429_vm5 = vcmp.lt.s32.totalorder %v427_v54, %v428_v31  ;;  %v1557_v25 = vld [vmem:[%s2032_s7 + $0x15] ss:$8 sm:$0x3] }
 0x1c4   : > { %v1150_v38 = vmul.f32 1.442695, %v1148_v58  ;;  %v430_v45 = vsel %vm429_vm5, %v427_v54, %v428_v31 }
 0x1c5   : > { %v1152_v40 = vmul.f32 1.442695, %v1149_v33  ;;  %v439_v33 = vrot.slane %v438_v34, 4 }
 0x1c6   : > { %1710 = vpow2.f32 %v1150_v38 }
 0x1c7   : > { %1712 = vpow2.f32 %v1152_v40  ;;  %vm440_vm7 = vcmp.lt.s32.totalorder %v438_v34, %v439_v33 }
 0x1cc   : > { %v1711_v13 = vpop.eup %1710 }
 0x1cd   : > { %v1154_v43 = vadd.f32 1.0, %v1711_v13  ;;  %v1157_v48 = vmul.f32 -0.5, %v1711_v13  ;;  %v1713_v5 = vpop.eup %1712  ;;  %v1160_v61 = vand.u32 2147483647, %v1711_v13 }
 0x1ce   : > { %v1163_v17 = vadd.f32 1.0, %v1713_v5  ;;  %v1166_v49 = vmul.f32 -0.5, %v1713_v5  ;;  %v1169_v41 = vand.u32 2147483647, %v1713_v5 }
 0x1cf   : > { %1714 = vlog2.f32 %v1154_v43  ;;  %v1158_v52 = vadd.f32 1.0, %v1157_v48  ;;  %vm1161_vm6 = vcmp.lt.f32.partialorder %v1160_v61, 0.0004427343 }
 0x1d0   : > { %1716 = vlog2.f32 %v1163_v17  ;;  %v1167_v11 = vadd.f32 1.0, %v1166_v49  ;;  %vm1170_vm3 = vcmp.lt.f32.partialorder %v1169_v41, 0.0004427343  ;;  %v441_v17 = vsel %vm440_vm7, %v438_v34, %v439_v33 }
 0x1d1   : > { %v1159_v63 = vmul.f32 %v1711_v13, %v1158_v52  ;;  %v442_v49 = vrot.slane %v441_v17, 2 }
 0x1d2   : > { %v1168_v46 = vmul.f32 %v1713_v5, %v1167_v11  ;;  %v431_v5 = vrot.slane %v430_v45, 2 }
 0x1d3   : > { %vm443_vm9 = vcmp.lt.s32.totalorder %v441_v17, %v442_v49 }
 0x1d4   : > { %vm432_vm8 = vcmp.lt.s32.totalorder %v430_v45, %v431_v5  ;;  %v444_v56 = vsel %vm443_vm9, %v441_v17, %v442_v49 }
 0x1d5   : > { %v1715_v15 = vpop.eup %1714  ;;  %v433_v61 = vsel %vm432_vm8, %v430_v45, %v431_v5 }
 0x1d6   : > { %v1156_v42 = vmul.f32 0.6931472, %v1715_v15  ;;  %v1717_v7 = vpop.eup %1716  ;;  %v434_v12 = vrot.slane %v433_v61, 1 }
 0x1d7   : > { %v1165_v20 = vmul.f32 0.6931472, %v1717_v7 }
 0x1d8   : > { %v1162_v9 = vsel %vm1161_vm6, %v1159_v63, %v1156_v42  ;;  %v445_v42 = vrot.slane %v444_v56, 1  ;;  %vm435_vm10 = vcmp.lt.s32.totalorder %v433_v61, %v434_v12 }
 0x1d9   : > { %v2450_v4 = vadd.f32 %v1162_v9, %v1142_v22  ;;  %v1171_v3 = vsel %vm1170_vm3, %v1168_v46, %v1165_v20  ;;  %v436_v54 = vsel %vm435_vm10, %v433_v61, %v434_v12  ;;  %vm1272_vm3 = vcmp.eq.s32.totalorder %v2331_v59, 14 }
 0x1da   : > { %v2452_v29 = vadd.f32 %v1171_v3, %v1143_v8  ;;  %v1225_v8 = vmul.f32 0.2, %v1557_v25  ;;  %vm446_vm13 = vcmp.lt.s32.totalorder %v444_v56, %v445_v42  ;;  %vm448_vm15 = vcmp.eq.s32.totalorder %v2049_v1, %v436_v54 }
 0x1db   : > { %v1179_v30 = vrot.slane %v2450_v4, 7  ;;  %vm450_vm1 = vcmp.eq.s32.totalorder %v2053_v2, %v436_v54 }
 0x1dc   : > { %v1180_v58 = vrot.slane %v2452_v29, 7  ;;  %v1226_v31 = vsel %vm1224_vm11, -1e+30, %v1225_v8 }
 0x1dd   : > { %v1181_v6 = vsel %vm599_vm0, -1e+30, %v1179_v30 }
 0x1de   : > { %v1188_v28 = vadd.f32 %v1184_v10, %v1181_v6  ;;  %v1182_v35 = vsel %vm599_vm0, -1e+30, %v1180_v58  ;;  %v447_v6 = vsel %vm446_vm13, %v444_v56, %v445_v42 }
 0x1df   : > { %v1189_v38 = vadd.f32 %v1185_v55, %v1182_v35  ;;  %vm449_vm6 = vcmp.eq.s32.totalorder %v2049_v1, %v447_v6  ;;  %vm451_vm2 = vcmp.eq.s32.totalorder %v2053_v2, %v447_v6 }
 0x1e0   : > { %v1192_v36 = vsub.f32 %v2450_v4, %v1188_v28  ;;  %v1190_v20 = vmax.f32 %v2450_v4, %v1188_v28  ;;  %v1232_v28 = vperm.slane %v1226_v31, 0 }
 0x1e1   : > { %v1193_v40 = vsub.f32 %v2452_v29, %v1189_v38  ;;  %v1191_v55 = vmax.f32 %v2452_v29, %v1189_v38  ;;  %v2476_v29 = vsel %vm448_vm15, -1e+30, %v2398_v51  ;;  %v1233_v38 = vperm.slane %v1226_v31, 1 }
 0x1e2   : > { %v1194_v44 = vand.u32 2147483647, %v1192_v36 }
 0x1e3   : > { %v1195_v37 = vand.u32 2147483647, %v1193_v40  ;;  %v2479_v40 = vsel %vm450_vm1, -1e+30, %v2401_v39 }
 0x1e4   : > { %v1196_v13 = vsub.f32 0.0, %v1194_v44 }
 0x1e5   : > { %v1197_v43 = vsub.f32 0.0, %v1195_v37 }
 0x1e6   : > { %v1198_v48 = vmul.f32 1.442695, %v1196_v13  ;;  %v2485_v13 = vsel %vm449_vm6, -1e+30, %v2407_v57  ;;  %vm1320_vm6 = vcmp.eq.s32.totalorder %v2331_v59, 15 }
 0x1e7   : > { %v1200_v52 = vmul.f32 1.442695, %v1197_v43  ;;  %v2488_v43 = vsel %vm451_vm2, -1e+30, %v2410_v60 }
 0x1e8   : > { %1718 = vpow2.f32 %v1198_v48  ;;  %v458_v48 = vmax.f32 %v2476_v29, %v2479_v40  ;;  %v465_v17 = vmax.f32 %v2485_v13, %v2488_v43 }
 0x1e9   : > { %1720 = vpow2.f32 %v1200_v52 }
 0x1ea   : > { %v459_v57 = vrot.slane %v458_v48, 4  ;;  %v466_v60 = vrot.slane %v465_v17, 4 }
 0x1ec   : > { %v467_v56 = vmax.f32 %v465_v17, %v466_v60 }
 0x1ee   : > { %v1719_v18 = vpop.eup %1718 }
 0x1ef   : > { %v1202_v11 = vadd.f32 1.0, %v1719_v18  ;;  %v1205_v41 = vmul.f32 -0.5, %v1719_v18  ;;  %v1721_v19 = vpop.eup %1720  ;;  %v1208_v53 = vand.u32 2147483647, %v1719_v18 }
 0x1f0   : > { %v1211_v63 = vadd.f32 1.0, %v1721_v19  ;;  %v1214_v22 = vmul.f32 -0.5, %v1721_v19  ;;  %v1217_v7 = vand.u32 2147483647, %v1721_v19 }
 0x1f1   : > { %1722 = vlog2.f32 %v1202_v11  ;;  %v1206_v15 = vadd.f32 1.0, %v1205_v41  ;;  %vm1209_vm12 = vcmp.lt.f32.partialorder %v1208_v53, 0.0004427343 }
 0x1f2   : > { %1724 = vlog2.f32 %v1211_v63  ;;  %v1215_v46 = vadd.f32 1.0, %v1214_v22  ;;  %vm1218_vm14 = vcmp.lt.f32.partialorder %v1217_v7, 0.0004427343  ;;  %v468_v22 = vrot.slane %v467_v56, 2 }
 0x1f3   : > { %v1207_v62 = vmul.f32 %v1719_v18, %v1206_v15 }
 0x1f4   : > { %v1216_v10 = vmul.f32 %v1721_v19, %v1215_v46  ;;  %v460_v19 = vmax.f32 %v458_v48, %v459_v57  ;;  %v469_v8 = vmax.f32 %v467_v56, %v468_v22 }
 0x1f6   : > { %v461_v63 = vrot.slane %v460_v19, 2  ;;  %v470_v31 = vrot.slane %v469_v8, 1 }
 0x1f7   : > { %v1723_v9 = vpop.eup %1722 }
 0x1f8   : > { %v1204_v3 = vmul.f32 0.6931472, %v1723_v9  ;;  %v1725_v30 = vpop.eup %1724  ;;  %v462_v46 = vmax.f32 %v460_v19, %v461_v63 }
 0x1f9   : > { %v1213_v58 = vmul.f32 0.6931472, %v1725_v30 }
 0x1fa   : > { %v1210_v34 = vsel %vm1209_vm12, %v1207_v62, %v1204_v3  ;;  %v463_v3 = vrot.slane %v462_v46, 1 }
 0x1fb   : > { %v2467_v35 = vadd.f32 %v1210_v34, %v1190_v20  ;;  %v1219_v4 = vsel %vm1218_vm14, %v1216_v10, %v1213_v58  ;;  %v1558_v20 = vld [vmem:[%s2032_s7 + $0x16] ss:$8 sm:$0x3] }
 0x1fc   : > { %v2470_v33 = vadd.f32 %v1219_v4, %v1191_v55  ;;  %v1273_v55 = vmul.f32 0.2, %v1558_v20  ;;  %v2501_v4 = vmax.f32 %v462_v46, %v463_v3 }
 0x1fd   : > { %v1227_v36 = vrot.slane %v2467_v35, 7 }
 0x1fe   : > { %v1228_v44 = vrot.slane %v2470_v33, 7  ;;  %vm472_vm7 = vcmp.eq.f32.partialorder %v2476_v29, %v2501_v4  ;;  %vm474_vm8 = vcmp.eq.f32.partialorder %v2479_v40, %v2501_v4 }
 0x1ff   : > { %v1229_v45 = vsel %vm599_vm0, -1e+30, %v1227_v36  ;;  %v478_v57 = vsel %vm474_vm8, %v2053_v2, 16 }
 0x200   : > { %v1236_v37 = vadd.f32 %v1232_v28, %v1229_v45  ;;  %v1230_v51 = vsel %vm599_vm0, -1e+30, %v1228_v44  ;;  %v1274_v45 = vsel %vm1272_vm3, -1e+30, %v1273_v55 }
 0x201   : > { %v1237_v39 = vadd.f32 %v1233_v38, %v1230_v51  ;;  %v2504_v51 = vmax.f32 %v469_v8, %v470_v31 }
 0x202   : > { %v1240_v5 = vsub.f32 %v2467_v35, %v1236_v37  ;;  %v1238_v6 = vmax.f32 %v2467_v35, %v1236_v37  ;;  %v1280_v37 = vperm.slane %v1274_v45, 0 }
 0x203   : > { %v1241_v52 = vsub.f32 %v2470_v33, %v1237_v39  ;;  %v1239_v44 = vmax.f32 %v2470_v33, %v1237_v39  ;;  %vm473_vm9 = vcmp.eq.f32.partialorder %v2485_v13, %v2504_v51  ;;  %vm475_vm10 = vcmp.eq.f32.partialorder %v2488_v43, %v2504_v51 }
 0x204   : > { %v1242_v49 = vand.u32 2147483647, %v1240_v5  ;;  %v1281_v39 = vperm.slane %v1274_v45, 1 }
 0x205   : > { %v1243_v18 = vand.u32 2147483647, %v1241_v52 }
 0x206   : > { %v1244_v61 = vsub.f32 0.0, %v1242_v49  ;;  %v476_v49 = vsel %vm472_vm7, %v2049_v1, 16 }
 0x207   : > { %v1245_v11 = vsub.f32 0.0, %v1243_v18  ;;  %vm480_vm11 = vcmp.lt.s32.totalorder %v476_v49, %v478_v57 }
 0x208   : > { %v1246_v41 = vmul.f32 1.442695, %v1244_v61  ;;  %v481_v22 = vsel %vm480_vm11, %v476_v49, %v478_v57 }
 0x209   : > { %v1248_v12 = vmul.f32 1.442695, %v1245_v11  ;;  %v477_v11 = vsel %vm473_vm9, %v2049_v1, 16  ;;  %v482_v46 = vrot.slane %v481_v22, 4 }
 0x20a   : > { %1726 = vpow2.f32 %v1246_v41  ;;  %v479_v41 = vsel %vm475_vm10, %v2053_v2, 16 }
 0x20b   : > { %1728 = vpow2.f32 %v1248_v12  ;;  %vm491_vm12 = vcmp.lt.s32.totalorder %v477_v11, %v479_v41  ;;  %vm483_vm13 = vcmp.lt.s32.totalorder %v481_v22, %v482_v46 }
 0x20c   : > { %v484_v20 = vsel %vm483_vm13, %v481_v22, %v482_v46 }
 0x20d   : > { %v485_v31 = vrot.slane %v484_v20, 2 }
 0x20f   : > { %vm486_vm15 = vcmp.lt.s32.totalorder %v484_v20, %v485_v31 }
 0x210   : > { %v1727_v15 = vpop.eup %1726 }
 0x211   : > { %v1250_v25 = vadd.f32 1.0, %v1727_v15  ;;  %v1253_v53 = vmul.f32 -0.5, %v1727_v15  ;;  %v1729_v42 = vpop.eup %1728  ;;  %v1256_v54 = vand.u32 2147483647, %v1727_v15 }
 0x212   : > { %v1259_v7 = vadd.f32 1.0, %v1729_v42  ;;  %v1262_v9 = vmul.f32 -0.5, %v1729_v42  ;;  %v1265_v30 = vand.u32 2147483647, %v1729_v42 }
 0x213   : > { %1730 = vlog2.f32 %v1250_v25  ;;  %v1254_v62 = vadd.f32 1.0, %v1253_v53  ;;  %vm1257_vm4 = vcmp.lt.f32.partialorder %v1256_v54, 0.0004427343 }
 0x214   : > { %1732 = vlog2.f32 %v1259_v7  ;;  %v1263_v10 = vadd.f32 1.0, %v1262_v9  ;;  %vm1266_vm5 = vcmp.lt.f32.partialorder %v1265_v30, 0.0004427343 }
 0x215   : > { %v1255_v34 = vmul.f32 %v1727_v15, %v1254_v62 }
 0x216   : > { %v1264_v36 = vmul.f32 %v1729_v42, %v1263_v10  ;;  %v492_v42 = vsel %vm491_vm12, %v477_v11, %v479_v41 }
 0x217   : > { %v493_v62 = vrot.slane %v492_v42, 4 }
 0x219   : > { %v1731_v58 = vpop.eup %1730  ;;  %vm494_vm14 = vcmp.lt.s32.totalorder %v492_v42, %v493_v62 }
 0x21a   : > { %v1252_v28 = vmul.f32 0.6931472, %v1731_v58  ;;  %v1733_v38 = vpop.eup %1732  ;;  %v495_v3 = vsel %vm494_vm14, %v492_v42, %v493_v62 }
 0x21b   : > { %v1261_v5 = vmul.f32 0.6931472, %v1733_v38  ;;  %v496_v58 = vrot.slane %v495_v3, 2 }
 0x21c   : > { %v1258_v48 = vsel %vm1257_vm4, %v1255_v34, %v1252_v28 }
 0x21d   : > { %v2506_v17 = vadd.f32 %v1258_v48, %v1238_v6  ;;  %v1267_v35 = vsel %vm1266_vm5, %v1264_v36, %v1261_v5  ;;  %v1559_v36 = vld [vmem:[%s2032_s7 + $0x17] ss:$8 sm:$0x3]  ;;  %vm497_vm1 = vcmp.lt.s32.totalorder %v495_v3, %v496_v58 }
 0x21e   : > { %v2512_v52 = vadd.f32 %v1267_v35, %v1239_v44  ;;  %v1321_v48 = vmul.f32 0.2, %v1559_v36 }
 0x21f   : > { %v1275_v33 = vrot.slane %v2506_v17, 7 }
 0x220   : > { %v1276_v18 = vrot.slane %v2512_v52, 7  ;;  %v1322_v11 = vsel %vm1320_vm6, -1e+30, %v1321_v48 }
 0x221   : > { %v1277_v61 = vsel %vm599_vm0, -1e+30, %v1275_v33  ;;  %v1328_v22 = vperm.slane %v1322_v11, 0 }
 0x222   : > { %v1284_v60 = vadd.f32 %v1280_v37, %v1277_v61  ;;  %v1278_v19 = vsel %vm599_vm0, -1e+30, %v1276_v18  ;;  %v487_v37 = vsel %vm486_vm15, %v484_v20, %v485_v31  ;;  %v498_v18 = vsel %vm497_vm1, %v495_v3, %v496_v58 }
 0x223   : > { %v1285_v12 = vadd.f32 %v1281_v39, %v1278_v19  ;;  %v488_v41 = vrot.slane %v487_v37, 1 }
 0x224   : > { %v1288_v56 = vsub.f32 %v2506_v17, %v1284_v60  ;;  %v1286_v33 = vmax.f32 %v2506_v17, %v1284_v60  ;;  %v232_v17 = vrot.slane %v2113_v24, 4 }
 0x225   : > { %v1289_v63 = vsub.f32 %v2512_v52, %v1285_v12  ;;  %v1287_v61 = vmax.f32 %v2512_v52, %v1285_v12  ;;  %vm489_vm4 = vcmp.lt.s32.totalorder %v487_v37, %v488_v41  ;;  %v1329_v52 = vperm.slane %v1322_v11, 1 }
 0x226   : > { %v1290_v15 = vand.u32 2147483647, %v1288_v56  ;;  %v490_v62 = vsel %vm489_vm4, %v487_v37, %v488_v41 }
 0x227   : > { %v1291_v25 = vand.u32 2147483647, %v1289_v63  ;;  %vm502_vm7 = vcmp.eq.s32.totalorder %v2049_v1, %v490_v62  ;;  %vm504_vm8 = vcmp.eq.s32.totalorder %v2053_v2, %v490_v62 }
 0x228   : > { %v1292_v53 = vsub.f32 0.0, %v1290_v15  ;;  %v499_v15 = vrot.slane %v498_v18, 1  ;;  %v508_v58 = vsel %vm504_vm8, -1e+30, %v2479_v40  ;;  %v1897_v40 = vmov 5.0  }
 0x229   : > { %v1293_v7 = vsub.f32 0.0, %v1291_v25  ;;  %v225_v25 = vrot.slane %v2111_v23, 4 }
 0x22a   : > { %v1294_v8 = vmul.f32 1.442695, %v1292_v53  ;;  %vm500_vm5 = vcmp.lt.s32.totalorder %v498_v18, %v499_v15 }
 0x22b   : > { %v1296_v9 = vmul.f32 1.442695, %v1293_v7  ;;  %v226_v7 = vadd.f32 %v225_v25, %v2111_v23  ;;  %v501_v3 = vsel %vm500_vm5, %v498_v18, %v499_v15 }
 0x22c   : > { %1734 = vpow2.f32 %v1294_v8  ;;  %v233_v8 = vadd.f32 %v232_v17, %v2113_v24  ;;  %vm503_vm9 = vcmp.eq.s32.totalorder %v2049_v1, %v501_v3  ;;  %v349_v17 = vadd.f32 %v2269_v14, %v2185_v32 }
 0x22d   : > { %1736 = vpow2.f32 %v1296_v9 }
 0x22e   : > { %v234_v24 = vrot.slane %v233_v8, 2 }
 0x232   : > { %v1735_v54 = vpop.eup %1734 }
 0x233   : > { %v1298_v10 = vadd.f32 1.0, %v1735_v54  ;;  %v1301_v30 = vmul.f32 -0.5, %v1735_v54  ;;  %v1737_v55 = vpop.eup %1736  ;;  %v1304_v38 = vand.u32 2147483647, %v1735_v54 }
 0x234   : > { %v1307_v34 = vadd.f32 1.0, %v1737_v55  ;;  %v1310_v28 = vmul.f32 -0.5, %v1737_v55  ;;  %v1313_v45 = vand.u32 2147483647, %v1737_v55 }
 0x235   : > { %1738 = vlog2.f32 %v1298_v10  ;;  %v1302_v6 = vadd.f32 1.0, %v1301_v30  ;;  %vm1305_vm2 = vcmp.lt.f32.partialorder %v1304_v38, 0.0004427343  ;;  %v227_v30 = vrot.slane %v226_v7, 2 }
 0x236   : > { %1740 = vlog2.f32 %v1307_v34  ;;  %v1311_v44 = vadd.f32 1.0, %v1310_v28  ;;  %vm1314_vm3 = vcmp.lt.f32.partialorder %v1313_v45, 0.0004427343  ;;  %v506_v34 = vsel %vm502_vm7, -1e+30, %v2476_v29 }
 0x237   : > { %v1303_v5 = vmul.f32 %v1735_v54, %v1302_v6  ;;  %v228_v36 = vadd.f32 %v227_v30, %v226_v7  ;;  %v507_v38 = vsel %vm503_vm9, -1e+30, %v2485_v13  ;;  %v235_v45 = vadd.f32 %v234_v24, %v233_v8 }
 0x238   : > { %v1312_v49 = vmul.f32 %v1737_v55, %v1311_v44  ;;  %v512_v48 = vmax.f32 %v506_v34, %v508_v58 }
 0x23a   : > { %v513_v37 = vrot.slane %v512_v48, 4 }
 0x23b   : > { %v1739_v35 = vpop.eup %1738 }
 0x23c   : > { %v1300_v39 = vmul.f32 0.6931472, %v1739_v35  ;;  %v1741_v57 = vpop.eup %1740  ;;  %v236_v35 = vrot.slane %v235_v45, 1 }
 0x23d   : > { %v1309_v56 = vmul.f32 0.6931472, %v1741_v57 }
 0x23e   : > { %v1306_v19 = vsel %vm1305_vm2, %v1303_v5, %v1300_v39  ;;  %v2566_v18 = vadd.f32 %v236_v35, %v235_v45 }
 0x23f   : > { %v2534_v63 = vadd.f32 %v1306_v19, %v1286_v33  ;;  %v1315_v59 = vsel %vm1314_vm3, %v1312_v49, %v1309_v56 }
 0x240   : > { %v2538_v60 = vadd.f32 %v1315_v59, %v1287_v61  ;;  %v348_v61 = vadd.f32 %v2261_v50, %v2182_v26  ;;  %vm527_vm11 = vcmp.gt.f32.partialorder %v2185_v32, %v2566_v18  ;;  %vm531_vm13 = vcmp.gt.f32.partialorder %v2269_v14, %v2566_v18 }
 0x241   : > { %v1323_v53 = vrot.slane %v2534_v63, 7  ;;  %vm537_vm6 = vcmp.gt.f32.partialorder %v2355_v27, %v2566_v18  ;;  %vm543_vm3 = vcmp.gt.f32.partialorder %v2432_v16, %v2566_v18  ;;  %vm549_vm5 = vcmp.gt.f32.partialorder %v2504_v51, %v2566_v18 }
 0x242   : > { %v1324_v12 = vrot.slane %v2538_v60, 7 }
 0x243   : > { %v1325_v42 = vsel %vm599_vm0, -1e+30, %v1323_v53  ;;  %v402_v53 = vadd.f32 %v2353_v21, %v348_v61 }
 0x244   : > { %v2544_v46 = vadd.f32 %v1328_v22, %v1325_v42  ;;  %v1326_v9 = vsel %vm599_vm0, -1e+30, %v1324_v12  ;;  %vm505_vm0 = vcmp.eq.s32.totalorder %v2053_v2, %v501_v3  ;;  %v229_v2 = vrot.slane %v228_v36, 1 }
 0x245   : > { %v2550_v20 = vadd.f32 %v1329_v52, %v1326_v9  ;;  %v509_v44 = vsel %vm505_vm0, -1e+30, %v2488_v43  ;;  %v514_v43 = vmax.f32 %v512_v48, %v513_v37  ;;  %v1898_v52 = vmov 0  }
 0x246   : > { %v1336_v54 = vsub.f32 %v2534_v63, %v2544_v46  ;;  %v519_v1 = vmax.f32 %v507_v38, %v509_v44  ;;  %v2564_v39 = vadd.f32 %v229_v2, %v228_v36  ;;  %v529_v7 = vsel %vm527_vm11, 1, %v1898_v52 }
 0x247   : > { %v1337_v10 = vsub.f32 %v2538_v60, %v2550_v20  ;;  %v515_v59 = vrot.slane %v514_v43, 2  ;;  %v1334_v32 = vmax.f32 %v2534_v63, %v2544_v46  ;;  %v539_v44 = vsel %vm537_vm6, 1, %v1898_v52 }
 0x248   : > { %v1338_v23 = vand.u32 2147483647, %v1336_v54  ;;  %v520_v29 = vrot.slane %v519_v1, 4  ;;  %vm526_vm10 = vcmp.gt.f32.partialorder %v2182_v26, %v2564_v39  ;;  %vm530_vm12 = vcmp.gt.f32.partialorder %v2261_v50, %v2564_v39 }
 0x249   : > { %v1339_v55 = vand.u32 2147483647, %v1337_v10  ;;  %v528_v50 = vsel %vm526_vm10, 1, %v1898_v52  ;;  %v532_v8 = vsel %vm530_vm12, 1, %v1898_v52  ;;  %v533_v54 = vsel %vm531_vm13, 1, %v1898_v52 }
 0x24a   : > { %v1340_v31 = vsub.f32 0.0, %v1338_v23  ;;  %v521_v41 = vmax.f32 %v519_v1, %v520_v29  ;;  %vm536_vm14 = vcmp.gt.f32.partialorder %v2353_v21, %v2564_v39  ;;  %v516_v26 = vmax.f32 %v514_v43, %v515_v59 }
 0x24b   : > { %v1341_v6 = vsub.f32 0.0, %v1339_v55  ;;  %v534_v24 = vadd.s32 %v532_v8, %v528_v50  ;;  %v1335_v55 = vmax.f32 %v2538_v60, %v2550_v20  ;;  %v535_v58 = vadd.s32 %v533_v54, %v529_v7 }
 0x24c   : > { %v1342_v28 = vmul.f32 1.442695, %v1340_v31  ;;  %v522_v42 = vrot.slane %v521_v41, 2  ;;  %v1368_v31 = vmul.f32 0.2, %v2564_v39  ;;  %v517_v20 = vrot.slane %v516_v26, 1 }
 0x24d   : > { %v1344_v5 = vmul.f32 1.442695, %v1341_v6  ;;  %v538_v6 = vsel %vm536_vm14, 1, %v1898_v52  ;;  %v1369_v60 = vmul.f32 0.2, %v2566_v18  ;;  %vm542_vm2 = vcmp.gt.f32.partialorder %v2430_v47, %v2564_v39 }
 0x24e   : > { %1742 = vpow2.f32 %v1342_v28  ;;  %v523_v34 = vmax.f32 %v521_v41, %v522_v42  ;;  %v403_v1 = vadd.f32 %v2355_v27, %v349_v17  ;;  %v540_v35 = vadd.s32 %v538_v6, %v534_v24 }
 0x24f   : > { %1744 = vpow2.f32 %v1344_v5  ;;  %v544_v21 = vsel %vm542_vm2, 1, %v1898_v52  ;;  %vm548_vm4 = vcmp.gt.f32.partialorder %v2501_v4, %v2564_v39  ;;  %v545_v27 = vsel %vm543_vm3, 1, %v1898_v52 }
 0x250   : > { %1746 = vrcp.f32 %v1897_v40  ;;  %v524_v2 = vrot.slane %v523_v34, 1  ;;  %v2618_v40 = vmax.f32 %v516_v26, %v517_v20  ;;  %v456_v61 = vadd.f32 %v2430_v47, %v402_v53 }
 0x251   : > { %v546_v41 = vadd.s32 %v544_v21, %v540_v35  ;;  %v551_v53 = vsel %vm549_vm5, 1, %v1898_v52  ;;  %vm1421_vm5 = vcmp.lt.s32.totalorder %v211_v0, 256 }
 0x252   : > { %vm554_vm7 = vcmp.gt.f32.partialorder %v2618_v40, %v2564_v39  ;;  %v510_v42 = vadd.f32 %v2501_v4, %v456_v61 }
 0x254   : > { %v1743_v33 = vpop.eup %1742 }
 0x255   : > { %v1346_v49 = vadd.f32 1.0, %v1743_v33  ;;  %v1349_v57 = vmul.f32 -0.5, %v1743_v33  ;;  %v1745_v13 = vpop.eup %1744  ;;  %v1352_v15 = vand.u32 2147483647, %v1743_v33 }
 0x256   : > { %v1355_v11 = vadd.f32 1.0, %v1745_v13  ;;  %v1358_v56 = vmul.f32 -0.5, %v1745_v13  ;;  %v2578_v25 = vpop.eup %1746  ;;  %v1361_v12 = vand.u32 2147483647, %v1745_v13 }
 0x257   : > { %1748 = vlog2.f32 %v1346_v49  ;;  %v1350_v19 = vadd.f32 1.0, %v1349_v57  ;;  %vm2594_vm15 = vcmp.lt.f32.partialorder %v1352_v15, 0.0004427343  ;;  %v581_v3 = vmul.f32 5.0, %v2578_v25 }
 0x258   : > { %1750 = vlog2.f32 %v1355_v11  ;;  %v1359_v22 = vadd.f32 1.0, %v1358_v56  ;;  %vm1362_vm1 = vcmp.lt.f32.partialorder %v1361_v12, 0.0004427343  ;;  %v541_v49 = vadd.s32 %v539_v44, %v535_v58 }
 0x259   : > { %v1351_v62 = vmul.f32 %v1743_v33, %v1350_v19  ;;  %v582_v36 = vsub.f32 1.0, %v581_v3  ;;  %v2627_v11 = vmax.f32 %v523_v34, %v524_v2  ;;  %v457_v19 = vadd.f32 %v2432_v16, %v403_v1 }
 0x25a   : > { %v1360_v23 = vmul.f32 %v1745_v13, %v1359_v22  ;;  %v550_v56 = vsel %vm548_vm4, 1, %v1898_v52  ;;  %v547_v22 = vadd.s32 %v545_v27, %v541_v49  ;;  %vm585_vm8 = vweird.f32 %v2578_v25 }
 0x25b   : > { %v583_v57 = vmul.f32 %v2578_v25, %v582_v36  ;;  %v552_v7 = vadd.s32 %v550_v56, %v546_v41  ;;  %vm555_vm9 = vcmp.gt.f32.partialorder %v2627_v11, %v2566_v18  ;;  %v511_v8 = vadd.f32 %v2504_v51, %v457_v19 }
 0x25c   : > { %v557_v26 = vsel %vm555_vm9, 1, %v1898_v52 }
 0x25d   : > { %v1749_v9 = vpop.eup %1748  ;;  %v584_v17 = vadd.f32 %v2578_v25, %v583_v57 }
 0x25e   : > { %v1348_v10 = vmul.f32 0.6931472, %v1749_v9  ;;  %v1751_v30 = vpop.eup %1750 }
 0x25f   : > { %v1357_v46 = vmul.f32 0.6931472, %v1751_v30  ;;  %v586_v14 = vsel %vm585_vm8, %v2578_v25, %v584_v17 }
 0x260   : > { %v1354_v63 = vsel %vm2594_vm15, %v1351_v62, %v1348_v10  ;;  %v556_v62 = vsel %vm554_vm7, 1, %v1898_v52  ;;  %v587_v30 = vmul.f32 %v586_v14, %v510_v42  ;;  %v588_v24 = vmul.f32 %v586_v14, %v511_v8 }
 0x261   : > { %v1364_v28 = vadd.f32 %v1354_v63, %v1334_v32  ;;  %v1363_v38 = vsel %vm1362_vm1, %v1360_v23, %v1357_v46  ;;  %v553_v32 = vadd.s32 %v551_v53, %v547_v22  ;;  %v558_v10 = vadd.s32 %v556_v62, %v552_v7 }
 0x262   : > { %v1365_v45 = vadd.f32 %v1363_v38, %v1335_v55  ;;  %v591_v23 = vadd.f32 %v456_v61, %v2564_v39  ;;  %v592_v55 = vadd.f32 %v457_v19, %v2566_v18  ;;  %v589_v63 = vadd.f32 1.0, %v587_v30 }
 0x263   : > { %v1366_v48 = vadd.f32 1.0, %v1364_v28  ;;  %v1370_v5 = vadd.f32 %v1368_v31, %v1364_v28  ;;  %v559_v31 = vadd.s32 %v557_v26, %v553_v32  ;;  %vm562_vm0 = vcmp.eq.s32.totalorder %v558_v10, 4 }
 0x264   : > { %v1367_v37 = vadd.f32 1.0, %v1365_v45  ;;  %v1371_v33 = vadd.f32 %v1369_v60, %v1365_v45  ;;  %vm570_vm10 = vcmp.eq.s32.totalorder %v558_v10, 5  ;;  %v590_v46 = vadd.f32 1.0, %v588_v24 }
 0x265   : > { %v1374_v29 = vrot.slane %v1370_v5, 7  ;;  %v593_v58 = vmul.f32 %v591_v23, %v586_v14  ;;  %v594_v25 = vmul.f32 %v592_v55, %v586_v14  ;;  %vm563_vm11 = vcmp.eq.s32.totalorder %v559_v31, 4 }
 0x266   : > { %v1375_v13 = vrot.slane %v1371_v33, 7  ;;  %vm571_vm12 = vcmp.eq.s32.totalorder %v559_v31, 5  ;;  %vm560_vm13 = vcmp.gt.s32.totalorder %v558_v10, 4  ;;  %v564_v60 = vsel %vm562_vm0, %v2564_v39, %v2430_v47 }
 0x267   : > { %v2624_v43 = vsub.f32 %v1366_v48, %v1374_v29  ;;  %vm568_vm14 = vcmp.gt.s32.totalorder %v558_v10, 5  ;;  %v572_v20 = vsel %vm570_vm10, %v2564_v39, %v2501_v4  ;;  %vm561_vm15 = vcmp.gt.s32.totalorder %v559_v31, 4 }
 0x268   : > { %v2633_v15 = vsub.f32 %v1367_v37, %v1375_v13  ;;  %vm569_vm1 = vcmp.gt.s32.totalorder %v559_v31, 5  ;;  %v565_v38 = vsel %vm563_vm11, %v2566_v18, %v2432_v16  ;;  %v573_v44 = vsel %vm571_vm12, %v2566_v18, %v2504_v51 }
 0x269   : > { %v1382_v59 = vand.u32 2147483647, %v2624_v43  ;;  %v566_v5 = vsel %vm560_vm13, %v2501_v4, %v564_v60  ;;  %v574_v47 = vsel %vm568_vm14, %v2618_v40, %v572_v20  ;;  %v567_v39 = vsel %vm561_vm15, %v2504_v51, %v565_v38 }
 0x26a   : > { %v1383_v50 = vand.u32 2147483647, %v2633_v15  ;;  %v575_v35 = vsel %vm569_vm1, %v2627_v11, %v573_v44  ;;  %v595_v21 = vsub.f32 %v589_v63, %v593_v58  ;;  %v576_v33 = vsub.f32 %v566_v5, %v574_v47 }
 0x26b   : > { %v1384_v12 = vsub.f32 0.0, %v1382_v59  ;;  %v596_v49 = vsub.f32 %v590_v46, %v594_v25  ;;  %v1380_v18 = vmax.f32 %v2624_v43, 0.0  ;;  %v577_v57 = vsub.f32 %v567_v39, %v575_v35 }
 0x26c   : > { %v1385_v9 = vsub.f32 0.0, %v1383_v50  ;;  %v597_v13 = vmax.f32 %v595_v21, 0.0  ;;  %v1381_v61 = vmax.f32 %v2633_v15, 0.0  ;;  %vm578_vm3 = vcmp.ge.f32.partialorder %v576_v33, 34.538776 }
 0x26d   : > { %v1386_v54 = vmul.f32 1.442695, %v1384_v12  ;;  %v598_v41 = vmax.f32 %v596_v49, 0.0  ;;  %vm579_vm4 = vcmp.ge.f32.partialorder %v577_v57, 34.538776 }
 0x26e   : > { %v1388_v3 = vmul.f32 1.442695, %v1385_v9 }
 0x26f   : > { %1752 = vpow2.f32 %v1386_v54 }
 0x270   : > { %1754 = vpow2.f32 %v1388_v3 }
 0x275   : > { %v1753_v34 = vpop.eup %1752 }
 0x276   : > { %v1390_v52 = vadd.f32 1.0, %v1753_v34  ;;  %v1393_v6 = vmul.f32 -0.5, %v1753_v34  ;;  %v1755_v28 = vpop.eup %1754  ;;  %v1396_v1 = vand.u32 2147483647, %v1753_v34 }
 0x277   : > { %v1399_v36 = vadd.f32 1.0, %v1755_v28  ;;  %v1402_v48 = vmul.f32 -0.5, %v1755_v28  ;;  %v1405_v37 = vand.u32 2147483647, %v1755_v28 }
 0x278   : > { %1756 = vlog2.f32 %v1390_v52  ;;  %v1394_v45 = vadd.f32 1.0, %v1393_v6  ;;  %vm1397_vm6 = vcmp.lt.f32.partialorder %v1396_v1, 0.0004427343 }
 0x279   : > { %1758 = vlog2.f32 %v1399_v36  ;;  %v1403_v2 = vadd.f32 1.0, %v1402_v48  ;;  %vm1406_vm2 = vcmp.lt.f32.partialorder %v1405_v37, 0.0004427343 }
 0x27a   : > { %v1395_v16 = vmul.f32 %v1753_v34, %v1394_v45 }
 0x27b   : > { %v1404_v40 = vmul.f32 %v1755_v28, %v1403_v2 }
 0x27e   : > { %v1757_v29 = vpop.eup %1756 }
 0x27f   : > { %v1392_v4 = vmul.f32 0.6931472, %v1757_v29  ;;  %v1759_v27 = vpop.eup %1758 }
 0x280   : > { %v1401_v11 = vmul.f32 0.6931472, %v1759_v27 }
 0x281   : > { %v1398_v51 = vsel %vm1397_vm6, %v1395_v16, %v1392_v4 }
 0x282   : > { %v1408_v19 = vadd.f32 %v1398_v51, %v1380_v18  ;;  %v1407_v56 = vsel %vm1406_vm2, %v1404_v40, %v1401_v11 }
 0x283   : > { %v1409_v43 = vadd.f32 %v1407_v56, %v1381_v61 }
 0x284   : > { %v1410_v59 = vsel %vm578_vm3, %v597_v13, %v1408_v19 }
 0x285   : > { %1414 = vst [vmem:[#allocation1] sm:$0xff] %v1410_v59  ;;  %v1411_v22 = vsel %vm579_vm4, %v598_v41, %v1409_v43 }
 0x286   : > { %1415 = vst [vmem:[#allocation1 + $0x9] sm:$0xff] %v1411_v22 }
 0x28d   : > { %v1417_v15 = vld [vmem:[#allocation1 + $0x5] ss:$9 sm:$0xff] }
 0x28e   : > { %1423 = vst.msk [vmem:[%s202_s19] sm:$0x3] %vm1421_vm5, %v1417_v15 }
 0x28f   : > { %1848 = shalt.err (!%p1845_p5)
}
 0x290   : > { %1569 = dma.vmem_to_hbm [thread:$0]  (%p1964_p11), %s1438_s29, 32, %s1440_s3, %s1425_s5  }
 0x291 PF: > { %s1451_s23 = sand.u32 1, %s1879_s9   ;;  %p1579_p7 = pnand %p1535_p9, %p1968_p12 }
 0x292   : > { %s1452_s7 = scalar_lea.sflag [#allocation4], %s1451_s23 }
 0x293   : > { %p1580_p8 = pneg %p1579_p7 }
 0x295   : > { %1874 = dma.done.wait (%p1580_p8), %s1452_s7, 32  }
 0x296   : > { %1876 = vsyncadd (%p1580_p8), %s1452_s7, 4294967264  ;;  %p18_p10 = scmp.ge.s32.totalorder %s1939_s15, 4   ;;  %s2720_s9 = smov %s1883_s10 }
 0x297   : > { %s2721_s10 = smov %s1887_s11  ;;  %s2722_s11 = smov %s1951_s18 }
 0x298   : > { %s2723_s12 = smov %s1939_s15  ;;  %20 = sbr.rel (!%p18_p10) target bundleno = 7 (0x7), region = 102 }
 0x29d   :  { %1458 = vsyncpa [#allocation3], 1 }
 0x29e   :  { %1460 = vsyncpa [#allocation3 + $0x1], 1 }
 0x29f   :  { %1461 = vsyncpa [#allocation6], 1 }
 0x2a0   :  { %1463 = vsyncpa [#allocation6 + $0x1], 1 }
 0x2a1   :  { %1464 = vsyncpa [#allocation4], 1 }
 0x2a2   :  { %1466 = vsyncpa [#allocation4 + $0x1], 1 }

</bundles_post_ra>
